<compile_context>
chip_gen: v6e
topology: v6e:2x2x1
jax: 0.10.0
libtpu: 0.0.40
codegen_flags: <defaults>
</compile_context>

<pallas_src>
import math
from functools import partial

import jax
import jax.numpy as jnp
from jax import lax
from jax.experimental import pallas as pl
from jax.experimental.pallas import tpu as pltpu

_VMEM_LIMIT = 48 * 1024 * 1024   # <= v7x physical 64 MiB; > v5e 16 MiB default


# ----------------------------------------------------------------------------
# Pallas kernel 1: fused [LayerNorm] -> matmul -> bias -> [QuickGELU] -> [+res]
# ----------------------------------------------------------------------------
def _linear_kernel(*refs, ln, gelu, has_res, eps):
    a_ref, w_ref, b_ref = refs[0], refs[1], refs[2]
    i = 3
    if ln:
        g_ref, be_ref = refs[i], refs[i + 1]
        i += 2
    if has_res:
        r_ref = refs[i]
        i += 1
    o_ref = refs[i]
    i += 1

    if ln:
        a_scr = refs[i]                                   # (bm, K) bf16 scratch
        # LayerNorm + f32->bf16 cast done once per row tile, cached in VMEM
        # and reused for every N tile (the A block is resident across j).
        @pl.when(pl.program_id(1) == 0)
        def _():
            a = a_ref[...].astype(jnp.float32)
            mu = jnp.mean(a, axis=-1, keepdims=True)
            d = a - mu
            var = jnp.mean(d * d, axis=-1, keepdims=True)
            a = d * lax.rsqrt(var + eps)
            a = a * g_ref[...] + be_ref[...]
            a_scr[...] = a.astype(jnp.bfloat16)
        a_bf = a_scr[...]
    else:
        a_bf = a_ref[...].astype(jnp.bfloat16)            # no-op when already bf16

    acc = jnp.dot(a_bf, w_ref[...], preferred_element_type=jnp.float32)
    acc = acc + b_ref[...]
    if gelu:
        acc = acc * jax.nn.sigmoid(1.702 * acc)           # QuickGELU
    if has_res:
        acc = acc + r_ref[...].astype(jnp.float32)
    o_ref[...] = acc.astype(o_ref.dtype)


def linear(a, w, b, *, gamma=None, beta=None, gelu=False, residual=None,
           out_dtype=jnp.bfloat16, bm=512, bn=256):
    """a: (M, K); w: (K, N) bf16; b: (N,) f32.  Optional fused LayerNorm on a
    (gamma/beta of size K), QuickGELU epilogue, and residual add (M, N)."""
    M, K = a.shape
    Kw, N = w.shape
    assert K == Kw
    # Full-K blocks (no k-loop).  Ragged M / N edges handled by cdiv masking;
    # block dims stay multiples of (8, 128) or equal to the full dim.
    if M <= bm:
        bm = M
    if N <= bn:
        bn = N
    grid = (pl.cdiv(M, bm), pl.cdiv(N, bn))

    in_specs = [
        pl.BlockSpec((bm, K), lambda i, j: (i, 0)),
        pl.BlockSpec((K, bn), lambda i, j: (0, j)),
        pl.BlockSpec((1, bn), lambda i, j: (0, j)),
    ]
    operands = [a, w.astype(jnp.bfloat16), b.reshape(1, N).astype(jnp.float32)]

    ln = gamma is not None
    if ln:
        in_specs += [pl.BlockSpec((1, K), lambda i, j: (0, 0)),
                     pl.BlockSpec((1, K), lambda i, j: (0, 0))]
        operands += [gamma.reshape(1, K).astype(jnp.float32),
                     beta.reshape(1, K).astype(jnp.float32)]
    has_res = residual is not None
    if has_res:
        in_specs.append(pl.BlockSpec((bm, bn), lambda i, j: (i, j)))
        operands.append(residual)

    scratch = [pltpu.VMEM((bm, K), jnp.bfloat16)] if ln else []

    return pl.pallas_call(
        partial(_linear_kernel, ln=ln, gelu=gelu, has_res=has_res, eps=1e-5),
        out_shape=jax.ShapeDtypeStruct((M, N), out_dtype),
        grid=grid,
        in_specs=in_specs,
        out_specs=pl.BlockSpec((bm, bn), lambda i, j: (i, j)),
        scratch_shapes=scratch,
        compiler_params=pltpu.CompilerParams(
            # j must stay sequential per core so the LN scratch reuse holds.
            dimension_semantics=("parallel", "arbitrary"),
            vmem_limit_bytes=_VMEM_LIMIT),
    )(*operands)


# ----------------------------------------------------------------------------
# Pallas kernel 2: multi-head self-attention straight from the packed QKV.
# Input block (bb, L, 3D) bf16, output block (bb, L, D) bf16 (lane dense).
# Heads are static python-unrolled; all slices are along lanes (last dim).
# ----------------------------------------------------------------------------
def _mha_kernel(*refs, heads, hd, has_mask):
    if has_mask:
        qkv_ref, m_ref, o_ref = refs
    else:
        qkv_ref, o_ref = refs
    D = heads * hd
    mask = m_ref[...] if has_mask else None          # (L, L) f32, broadcast b

    for h in range(heads):
        q = qkv_ref[:, :, h * hd:(h + 1) * hd]               # (bb, L, hd) bf16
        k = qkv_ref[:, :, D + h * hd:D + (h + 1) * hd]
        v = qkv_ref[:, :, 2 * D + h * hd:2 * D + (h + 1) * hd]
        # scale 1/sqrt(hd) already folded into the q columns of w_in / b_in.
        s = jnp.einsum('bqd,bkd->bqk', q, k,
                       preferred_element_type=jnp.float32)   # (bb, L, L)
        if has_mask:
            s = s + mask
        m = jnp.max(s, axis=-1, keepdims=True)
        p = jnp.exp(s - m)
        l = jnp.sum(p, axis=-1, keepdims=True)
        # TODO(synk): a fully -inf masked row gives l=0 -> inf; not a CLIP case.
        o = jnp.einsum('bqk,bkd->bqd', p.astype(q.dtype), v,
                       preferred_element_type=jnp.float32)
        o = o * pl.reciprocal(l, approx=True)
        o_ref[:, :, h * hd:(h + 1) * hd] = o.astype(o_ref.dtype)


def _pick_mha_batch_block(B, L, threeD, budget=4 * 1024 * 1024):
    """Largest divisor of B (<= 8) whose (bb, L, 3D) bf16 block fits ~budget."""
    bb = max(1, min(8, B, budget // max(1, L * threeD * 2)))
    while B % bb:
        bb -= 1
    return bb


def multihead_attention(qkv, attn_mask, *, heads, block_b):
    """qkv: (B, L, 3D) bf16 packed as [q | k | v] columns; returns (B, L, D)."""
    B, L, threeD = qkv.shape
    D = threeD // 3
    hd = D // heads
    has_mask = attn_mask is not None
    in_specs = [pl.BlockSpec((block_b, L, threeD), lambda b: (b, 0, 0))]
    operands = [qkv]
    if has_mask:
        # TODO(synk): only additive float attn_mask (CLIP's usage) supported;
        # bool / key_padding masks of nn.MultiheadAttention are not.
        in_specs.append(pl.BlockSpec((L, L), lambda b: (0, 0)))
        operands.append(attn_mask.astype(jnp.float32))
    return pl.pallas_call(
        partial(_mha_kernel, heads=heads, hd=hd, has_mask=has_mask),
        out_shape=jax.ShapeDtypeStruct((B, L, D), jnp.bfloat16),
        grid=(B // block_b,),
        in_specs=in_specs,
        out_specs=pl.BlockSpec((block_b, L, D), lambda b: (b, 0, 0)),
        compiler_params=pltpu.CompilerParams(
            dimension_semantics=("parallel",),
            vmem_limit_bytes=_VMEM_LIMIT),
    )(*operands)


# ----------------------------------------------------------------------------
# Transformer forward (matches torch: x is (L, N, D); pre-LN residual blocks).
# ----------------------------------------------------------------------------
def transformer_forward(params, x, *, heads, attn_mask=None):
    L, B, D = x.shape
    hd = D // heads
    scale = 1.0 / math.sqrt(hd)
    # Fold the attention scale into the q columns of the in-projection (free).
    q_scale = jnp.concatenate([jnp.full((D,), scale, jnp.float32),
                               jnp.ones((2 * D,), jnp.float32)])
    block_b = _pick_mha_batch_block(B, L, 3 * D)

    x2 = jnp.transpose(x, (1, 0, 2)).reshape(B * L, D).astype(jnp.float32)
    for p in params:
        w_in = (p["w_in"].astype(jnp.float32) * q_scale[None, :]).astype(jnp.bfloat16)
        b_in = p["b_in"] * q_scale
        # ----- x = x + attn(ln_1(x)) --------------------------------------
        qkv = linear(x2, w_in, b_in, gamma=p["ln1_g"], beta=p["ln1_b"],
                     out_dtype=jnp.bfloat16)                  # (B*L, 3D)
        attn = multihead_attention(qkv.reshape(B, L, 3 * D), attn_mask,
                                   heads=heads, block_b=block_b)   # (B, L, D)
        x2 = linear(attn.reshape(B * L, D), p["w_out"], p["b_out"],
                    residual=x2, out_dtype=jnp.float32)
        # ----- x = x + mlp(ln_2(x)) ---------------------------------------
        h = linear(x2, p["w_fc"], p["b_fc"], gamma=p["ln2_g"], beta=p["ln2_b"],
                   gelu=True, out_dtype=jnp.bfloat16)         # (B*L, 4D)
        x2 = linear(h, p["w_proj"], p["b_proj"], residual=x2,
                    out_dtype=jnp.float32)
    return jnp.transpose(x2.reshape(B, L, D), (1, 0, 2))


# ----------------------------------------------------------------------------
# Pure-JAX reference (same bf16 casting points) for a correctness check.
# ----------------------------------------------------------------------------
def _ref_layer_norm(x, g, b, eps=1e-5):
    mu = jnp.mean(x, axis=-1, keepdims=True)
    d = x - mu
    var = jnp.mean(d * d, axis=-1, keepdims=True)
    return d * lax.rsqrt(var + eps) * g.reshape(1, -1) + b.reshape(1, -1)


def transformer_reference(params, x, *, heads, attn_mask=None):
    L, B, D = x.shape
    hd = D // heads
    x2 = jnp.transpose(x, (1, 0, 2)).reshape(B * L, D).astype(jnp.float32)
    for p in params:
        h = _ref_layer_norm(x2, p["ln1_g"], p["ln1_b"]).astype(jnp.bfloat16)
        qkv = jnp.dot(h, p["w_in"], preferred_element_type=jnp.float32) + p["b_in"]
        qkv = qkv.astype(jnp.bfloat16).reshape(B, L, 3, heads, hd)
        qkv = jnp.transpose(qkv, (2, 0, 3, 1, 4))
        q, k, v = qkv[0], qkv[1], qkv[2]
        s = jnp.einsum('bhqd,bhkd->bhqk', q, k,
                       preferred_element_type=jnp.float32) / math.sqrt(hd)
        if attn_mask is not None:
            s = s + attn_mask.astype(jnp.float32)
        m = jnp.max(s, axis=-1, keepdims=True)
        pe = jnp.exp(s - m)
        l = jnp.sum(pe, axis=-1, keepdims=True)
        o = jnp.einsum('bhqk,bhkd->bhqd', pe.astype(jnp.bfloat16), v,
                       preferred_element_type=jnp.float32) / l
        o = o.astype(jnp.bfloat16)
        o = jnp.transpose(o, (0, 2, 1, 3)).reshape(B * L, D)
        x2 = x2 + jnp.dot(o, p["w_out"],
                          preferred_element_type=jnp.float32) + p["b_out"]
        h = _ref_layer_norm(x2, p["ln2_g"], p["ln2_b"]).astype(jnp.bfloat16)
        z = jnp.dot(h, p["w_fc"], preferred_element_type=jnp.float32) + p["b_fc"]
        z = (z * jax.nn.sigmoid(1.702 * z)).astype(jnp.bfloat16)
        x2 = x2 + jnp.dot(z, p["w_proj"],
                          preferred_element_type=jnp.float32) + p["b_proj"]
    return jnp.transpose(x2.reshape(B, L, D), (1, 0, 2))


# ----------------------------------------------------------------------------
# Deterministic parameter construction (shapes mirror the torch __init__).
# Weight matrices are stored pre-transposed (in, out) and in bf16.
# ----------------------------------------------------------------------------
def make_transformer_params(key, width, layers):
    blocks = []
    for kk in jax.random.split(key, layers):
        ks = jax.random.split(kk, 6)

        def w(k, fi, fo):
            bound = 1.0 / math.sqrt(fi)
            return jax.random.uniform(k, (fi, fo), jnp.float32,
                                      -bound, bound).astype(jnp.bfloat16)

        def b(k, fi, fo):
            bound = 1.0 / math.sqrt(fi)
            return jax.random.uniform(k, (fo,), jnp.float32, -bound, bound)

        blocks.append(dict(
            ln1_g=jnp.ones((width,), jnp.float32),
            ln1_b=jnp.zeros((width,), jnp.float32),
            w_in=w(ks[0], width, 3 * width),            # MHA in_proj
            b_in=jnp.zeros((3 * width,), jnp.float32),  # torch zeros these
            w_out=w(ks[1], width, width),               # MHA out_proj
            b_out=jnp.zeros((width,), jnp.float32),
            ln2_g=jnp.ones((width,), jnp.float32),
            ln2_b=jnp.zeros((width,), jnp.float32),
            w_fc=w(ks[2], width, 4 * width),            # mlp.c_fc
            b_fc=b(ks[3], width, 4 * width),
            w_proj=w(ks[4], 4 * width, width),          # mlp.c_proj
            b_proj=b(ks[5], 4 * width, width),
        ))
    return blocks


# ----------------------------------------------------------------------------
# Main
# ----------------------------------------------------------------------------
if __name__ == "__main__":
    key = jax.random.PRNGKey(0)
    k_x, k_p = jax.random.split(key)

    width, n_layers, heads = 64, 2, 4     # small Transformer config
    seq, batch = 8, 2

    x = jax.random.normal(k_x, (seq, batch, width), jnp.float32)
    params = make_transformer_params(k_p, width, n_layers)

    # CLIP-style causal attn_mask (text tower usage).
    attn_mask = jnp.triu(jnp.full((seq, seq), -jnp.inf, jnp.float32), 1)

    fwd = jax.jit(partial(transformer_forward, heads=heads, attn_mask=attn_mask))
    out = fwd(params, x)
    jax.block_until_ready(out)

    assert out.shape == (seq, batch, width)
    assert bool(jnp.all(jnp.isfinite(out)))

    ref = transformer_reference(params, x, heads=heads, attn_mask=attn_mask)
    err = float(jnp.max(jnp.abs(out - ref)))
    assert bool(jnp.allclose(out, ref, atol=3e-2, rtol=3e-2)), err

    print("KERNEL_OK")
</pallas_src>

<mosaic_0001>
module attributes {stable_mosaic.version = 11 : i64} {
  func.func @_linear_kernel(%arg0: i32, %arg1: i32, %arg2: memref<16x64xf32, #tpu.memory_space<vmem>>, %arg3: memref<64x192xbf16, #tpu.memory_space<vmem>>, %arg4: memref<1x192xf32, #tpu.memory_space<vmem>>, %arg5: memref<1x64xf32, #tpu.memory_space<vmem>>, %arg6: memref<1x64xf32, #tpu.memory_space<vmem>>, %arg7: memref<16x192xbf16, #tpu.memory_space<vmem>>, %arg8: memref<16x64xbf16, #tpu.memory_space<vmem>>) attributes {dimension_semantics = [#tpu.dimension_semantics<parallel>, #tpu.dimension_semantics<arbitrary>], iteration_bounds = array<i64: 1, 1>, scalar_prefetch = 0 : i64, scratch_operands = 1 : i64, tpu.core_type = #tpu.core_type<tc>, window_params = [{transform_indices = @transform_0, window_bounds = array<i64: 16, 64>}, {transform_indices = @transform_1, window_bounds = array<i64: 64, 192>}, {transform_indices = @transform_2, window_bounds = array<i64: 1, 192>}, {pipeline_mode = #tpu.pipeline_mode<synchronous>, transform_indices = @transform_3, window_bounds = array<i64: 1, 64>}, {pipeline_mode = #tpu.pipeline_mode<synchronous>, transform_indices = @transform_4, window_bounds = array<i64: 1, 64>}, {transform_indices = @transform_5, window_bounds = array<i64: 16, 192>}]} {
    %c0_i32 = arith.constant 0 : i32
    %0 = arith.cmpi eq, %arg1, %c0_i32 : i32
    %1 = arith.extui %0 : i1 to i32
    %c0_i32_0 = arith.constant 0 : i32
    %2 = arith.cmpi ne, %1, %c0_i32_0 : i32
    scf.if %2 {
      %c0_8 = arith.constant 0 : index
      %c0_9 = arith.constant 0 : index
      %11 = vector.load %arg2[%c0_8, %c0_9] : memref<16x64xf32, #tpu.memory_space<vmem>>, vector<16x64xf32>
      %cst_10 = arith.constant dense<0.000000e+00> : vector<16xf32>
      %12 = vector.multi_reduction <add>, %11, %cst_10 [1] : vector<16x64xf32> to vector<16xf32>
      %13 = vector.shape_cast %12 : vector<16xf32> to vector<16x1xf32>
      %cst_11 = arith.constant 6.400000e+01 : f32
      %14 = vector.broadcast %cst_11 : f32 to vector<16x1xf32>
      %15 = arith.divf %13, %14 : vector<16x1xf32>
      %16 = vector.broadcast %15 : vector<16x1xf32> to vector<16x64xf32>
      %17 = arith.subf %11, %16 : vector<16x64xf32>
      %18 = arith.mulf %17, %17 : vector<16x64xf32>
      %cst_12 = arith.constant dense<0.000000e+00> : vector<16xf32>
      %19 = vector.multi_reduction <add>, %18, %cst_12 [1] : vector<16x64xf32> to vector<16xf32>
      %20 = vector.shape_cast %19 : vector<16xf32> to vector<16x1xf32>
      %cst_13 = arith.constant 6.400000e+01 : f32
      %21 = vector.broadcast %cst_13 : f32 to vector<16x1xf32>
      %22 = arith.divf %20, %21 : vector<16x1xf32>
      %cst_14 = arith.constant 9.99999974E-6 : f32
      %23 = vector.broadcast %cst_14 : f32 to vector<16x1xf32>
      %24 = arith.addf %22, %23 : vector<16x1xf32>
      %25 = math.rsqrt %24 : vector<16x1xf32>
      %26 = vector.broadcast %25 : vector<16x1xf32> to vector<16x64xf32>
      %27 = arith.mulf %17, %26 : vector<16x64xf32>
      %c0_15 = arith.constant 0 : index
      %c0_16 = arith.constant 0 : index
      %28 = vector.load %arg5[%c0_15, %c0_16] : memref<1x64xf32, #tpu.memory_space<vmem>>, vector<1x64xf32>
      %29 = vector.broadcast %28 : vector<1x64xf32> to vector<16x64xf32>
      %30 = arith.mulf %27, %29 : vector<16x64xf32>
      %c0_17 = arith.constant 0 : index
      %c0_18 = arith.constant 0 : index
      %31 = vector.load %arg6[%c0_17, %c0_18] : memref<1x64xf32, #tpu.memory_space<vmem>>, vector<1x64xf32>
      %32 = vector.broadcast %31 : vector<1x64xf32> to vector<16x64xf32>
      %33 = arith.addf %30, %32 : vector<16x64xf32>
      %34 = arith.truncf %33 : vector<16x64xf32> to vector<16x64xbf16>
      %c0_19 = arith.constant 0 : index
      %c0_20 = arith.constant 0 : index
      %35 = vector.load %arg8[%c0_19, %c0_20] : memref<16x64xbf16, #tpu.memory_space<vmem>>, vector<16x64xbf16>
      tpu.vector_store %arg8[%c0_19, %c0_20], %34 {strides = array<i32>} : memref<16x64xbf16, #tpu.memory_space<vmem>>, vector<16x64xbf16>,
    } else {
    }
    %c0 = arith.constant 0 : index
    %c0_1 = arith.constant 0 : index
    %3 = vector.load %arg8[%c0, %c0_1] : memref<16x64xbf16, #tpu.memory_space<vmem>>, vector<16x64xbf16>
    %c0_2 = arith.constant 0 : index
    %c0_3 = arith.constant 0 : index
    %4 = vector.load %arg3[%c0_2, %c0_3] : memref<64x192xbf16, #tpu.memory_space<vmem>>, vector<64x192xbf16>
    %cst = arith.constant dense<0.000000e+00> : vector<16x192xf32>
    %5 = tpu.matmul %3, %4, %cst {dimension_numbers = #tpu.dot_dimension_numbers<[1], [0], [0], [1], [0, 0, 1, 1], [], []>} : vector<16x64xbf16>, vector<64x192xbf16>, vector<16x192xf32> -> vector<16x192xf32>
    %c0_4 = arith.constant 0 : index
    %c0_5 = arith.constant 0 : index
    %6 = vector.load %arg4[%c0_4, %c0_5] : memref<1x192xf32, #tpu.memory_space<vmem>>, vector<1x192xf32>
    %7 = vector.broadcast %6 : vector<1x192xf32> to vector<16x192xf32>
    %8 = arith.addf %5, %7 : vector<16x192xf32>
    %9 = arith.truncf %8 : vector<16x192xf32> to vector<16x192xbf16>
    %c0_6 = arith.constant 0 : index
    %c0_7 = arith.constant 0 : index
    %10 = vector.load %arg7[%c0_6, %c0_7] : memref<16x192xbf16, #tpu.memory_space<vmem>>, vector<16x192xbf16>
    tpu.vector_store %arg7[%c0_6, %c0_7], %9 {strides = array<i32>} : memref<16x192xbf16, #tpu.memory_space<vmem>>, vector<16x192xbf16>,
    return
  }
  func.func @transform_0(%arg0: i32, %arg1: i32) -> (i32, i32) {
    %c0_i32 = arith.constant 0 : i32
    %c0_i32_0 = arith.constant 0 : i32
    return %arg0, %c0_i32 : i32, i32
  }
  func.func @transform_1(%arg0: i32, %arg1: i32) -> (i32, i32) {
    %c0_i32 = arith.constant 0 : i32
    %c0_i32_0 = arith.constant 0 : i32
    return %c0_i32, %arg1 : i32, i32
  }
  func.func @transform_2(%arg0: i32, %arg1: i32) -> (i32, i32) {
    %c0_i32 = arith.constant 0 : i32
    %c0_i32_0 = arith.constant 0 : i32
    return %c0_i32, %arg1 : i32, i32
  }
  func.func @transform_3(%arg0: i32, %arg1: i32) -> (i32, i32) {
    %c0_i32 = arith.constant 0 : i32
    %c0_i32_0 = arith.constant 0 : i32
    %c0_i32_1 = arith.constant 0 : i32
    return %c0_i32, %c0_i32_0 : i32, i32
  }
  func.func @transform_4(%arg0: i32, %arg1: i32) -> (i32, i32) {
    %c0_i32 = arith.constant 0 : i32
    %c0_i32_0 = arith.constant 0 : i32
    %c0_i32_1 = arith.constant 0 : i32
    return %c0_i32, %c0_i32_0 : i32, i32
  }
  func.func @transform_5(%arg0: i32, %arg1: i32) -> (i32, i32) {
    %c0_i32 = arith.constant 0 : i32
    return %arg0, %arg1 : i32, i32
  }
}

module attributes {stable_mosaic.version = 11 : i64} {
  func.func @_linear_kernel(%arg0: i32, %arg1: i32, %arg2: memref<16x64xbf16, #tpu.memory_space<vmem>>, %arg3: memref<64x64xbf16, #tpu.memory_space<vmem>>, %arg4: memref<1x64xf32, #tpu.memory_space<vmem>>, %arg5: memref<16x64xf32, #tpu.memory_space<vmem>>, %arg6: memref<16x64xf32, #tpu.memory_space<vmem>>) attributes {dimension_semantics = [#tpu.dimension_semantics<parallel>, #tpu.dimension_semantics<arbitrary>], iteration_bounds = array<i64: 1, 1>, scalar_prefetch = 0 : i64, scratch_operands = 0 : i64, tpu.core_type = #tpu.core_type<tc>, window_params = [{transform_indices = @transform_0, window_bounds = array<i64: 16, 64>}, {transform_indices = @transform_1, window_bounds = array<i64: 64, 64>}, {transform_indices = @transform_2, window_bounds = array<i64: 1, 64>}, {transform_indices = @transform_3, window_bounds = array<i64: 16, 64>}, {transform_indices = @transform_4, window_bounds = array<i64: 16, 64>}]} {
    %c0 = arith.constant 0 : index
    %c0_0 = arith.constant 0 : index
    %0 = vector.load %arg2[%c0, %c0_0] : memref<16x64xbf16, #tpu.memory_space<vmem>>, vector<16x64xbf16>
    %c0_1 = arith.constant 0 : index
    %c0_2 = arith.constant 0 : index
    %1 = vector.load %arg3[%c0_1, %c0_2] : memref<64x64xbf16, #tpu.memory_space<vmem>>, vector<64x64xbf16>
    %cst = arith.constant dense<0.000000e+00> : vector<16x64xf32>
    %2 = tpu.matmul %0, %1, %cst {dimension_numbers = #tpu.dot_dimension_numbers<[1], [0], [0], [1], [0, 0, 1, 1], [], []>} : vector<16x64xbf16>, vector<64x64xbf16>, vector<16x64xf32> -> vector<16x64xf32>
    %c0_3 = arith.constant 0 : index
    %c0_4 = arith.constant 0 : index
    %3 = vector.load %arg4[%c0_3, %c0_4] : memref<1x64xf32, #tpu.memory_space<vmem>>, vector<1x64xf32>
    %4 = vector.broadcast %3 : vector<1x64xf32> to vector<16x64xf32>
    %5 = arith.addf %2, %4 : vector<16x64xf32>
    %c0_5 = arith.constant 0 : index
    %c0_6 = arith.constant 0 : index
    %6 = vector.load %arg5[%c0_5, %c0_6] : memref<16x64xf32, #tpu.memory_space<vmem>>, vector<16x64xf32>
    %7 = arith.addf %5, %6 : vector<16x64xf32>
    %c0_7 = arith.constant 0 : index
    %c0_8 = arith.constant 0 : index
    %8 = vector.load %arg6[%c0_7, %c0_8] : memref<16x64xf32, #tpu.memory_space<vmem>>, vector<16x64xf32>
    tpu.vector_store %arg6[%c0_7, %c0_8], %7 {strides = array<i32>} : memref<16x64xf32, #tpu.memory_space<vmem>>, vector<16x64xf32>,
    return
  }
  func.func @transform_0(%arg0: i32, %arg1: i32) -> (i32, i32) {
    %c0_i32 = arith.constant 0 : i32
    %c0_i32_0 = arith.constant 0 : i32
    return %arg0, %c0_i32 : i32, i32
  }
  func.func @transform_1(%arg0: i32, %arg1: i32) -> (i32, i32) {
    %c0_i32 = arith.constant 0 : i32
    %c0_i32_0 = arith.constant 0 : i32
    return %c0_i32, %arg1 : i32, i32
  }
  func.func @transform_2(%arg0: i32, %arg1: i32) -> (i32, i32) {
    %c0_i32 = arith.constant 0 : i32
    %c0_i32_0 = arith.constant 0 : i32
    return %c0_i32, %arg1 : i32, i32
  }
  func.func @transform_3(%arg0: i32, %arg1: i32) -> (i32, i32) {
    %c0_i32 = arith.constant 0 : i32
    return %arg0, %arg1 : i32, i32
  }
  func.func @transform_4(%arg0: i32, %arg1: i32) -> (i32, i32) {
    %c0_i32 = arith.constant 0 : i32
    return %arg0, %arg1 : i32, i32
  }
}

module attributes {stable_mosaic.version = 11 : i64} {
  func.func @_mha_kernel(%arg0: i32, %arg1: memref<2x8x192xbf16, #tpu.memory_space<vmem>>, %arg2: memref<8x8xf32, #tpu.memory_space<vmem>>, %arg3: memref<2x8x64xbf16, #tpu.memory_space<vmem>>) attributes {dimension_semantics = [#tpu.dimension_semantics<parallel>], iteration_bounds = array<i64: 1>, scalar_prefetch = 0 : i64, scratch_operands = 0 : i64, tpu.core_type = #tpu.core_type<tc>, window_params = [{transform_indices = @transform_0, window_bounds = array<i64: 2, 8, 192>}, {pipeline_mode = #tpu.pipeline_mode<synchronous>, transform_indices = @transform_1, window_bounds = array<i64: 8, 8>}, {transform_indices = @transform_2, window_bounds = array<i64: 2, 8, 64>}]} {
    %c0 = arith.constant 0 : index
    %c0_0 = arith.constant 0 : index
    %0 = vector.load %arg2[%c0, %c0_0] : memref<8x8xf32, #tpu.memory_space<vmem>>, vector<8x8xf32>
    %c0_1 = arith.constant 0 : index
    %c0_2 = arith.constant 0 : index
    %c0_3 = arith.constant 0 : index
    %1 = vector.load %arg1[%c0_1, %c0_2, %c0_3] : memref<2x8x192xbf16, #tpu.memory_space<vmem>>, vector<2x8x16xbf16>
    %c0_4 = arith.constant 0 : index
    %c0_5 = arith.constant 0 : index
    %c64 = arith.constant 64 : index
    %2 = vector.load %arg1[%c0_4, %c0_5, %c64] : memref<2x8x192xbf16, #tpu.memory_space<vmem>>, vector<2x8x16xbf16>
    %c0_6 = arith.constant 0 : index
    %c0_7 = arith.constant 0 : index
    %c128 = arith.constant 128 : index
    %3 = vector.load %arg1[%c0_6, %c0_7, %c128] : memref<2x8x192xbf16, #tpu.memory_space<vmem>>, vector<2x8x16xbf16>
    "tpu.trace_start"() <{level = 10 : i32, message = "bqd,bkd->bqk"}> : () -> ()
    %cst = arith.constant dense<0.000000e+00> : vector<2x8x8xf32>
    %4 = tpu.matmul %1, %2, %cst {dimension_numbers = #tpu.dot_dimension_numbers<[2], [2], [1], [1], [0, 0, 0, 1, 1, 1], [0], [0]>} : vector<2x8x16xbf16>, vector<2x8x16xbf16>, vector<2x8x8xf32> -> vector<2x8x8xf32>
    "tpu.trace_stop"() : () -> ()
    %5 = vector.shape_cast %0 : vector<8x8xf32> to vector<1x8x8xf32>
    %6 = vector.broadcast %5 : vector<1x8x8xf32> to vector<2x8x8xf32>
    %7 = arith.addf %4, %6 : vector<2x8x8xf32>
    %cst_8 = arith.constant dense<0xFF800000> : vector<2x8xf32>
    %8 = vector.multi_reduction <maximumf>, %7, %cst_8 [2] : vector<2x8x8xf32> to vector<2x8xf32>
    %9 = vector.shape_cast %8 : vector<2x8xf32> to vector<2x8x1xf32>
    %10 = vector.broadcast %9 : vector<2x8x1xf32> to vector<2x8x8xf32>
    %11 = arith.subf %7, %10 : vector<2x8x8xf32>
    %12 = math.exp %11 : vector<2x8x8xf32>
    %cst_9 = arith.constant dense<0.000000e+00> : vector<2x8xf32>
    %13 = vector.multi_reduction <add>, %12, %cst_9 [2] : vector<2x8x8xf32> to vector<2x8xf32>
    %14 = vector.shape_cast %13 : vector<2x8xf32> to vector<2x8x1xf32>
    %15 = arith.truncf %12 : vector<2x8x8xf32> to vector<2x8x8xbf16>
    "tpu.trace_start"() <{level = 10 : i32, message = "bqk,bkd->bqd"}> : () -> ()
    %cst_10 = arith.constant dense<0.000000e+00> : vector<2x8x16xf32>
    %16 = tpu.matmul %15, %3, %cst_10 {dimension_numbers = #tpu.dot_dimension_numbers<[2], [1], [1], [2], [0, 0, 0, 1, 1, 2], [0], [0]>} : vector<2x8x8xbf16>, vector<2x8x16xbf16>, vector<2x8x16xf32> -> vector<2x8x16xf32>
    "tpu.trace_stop"() : () -> ()
    %17 = tpu.reciprocal %14 {approx = true} : vector<2x8x1xf32> -> vector<2x8x1xf32>
    %18 = vector.broadcast %17 : vector<2x8x1xf32> to vector<2x8x16xf32>
    %19 = arith.mulf %16, %18 : vector<2x8x16xf32>
    %20 = arith.truncf %19 : vector<2x8x16xf32> to vector<2x8x16xbf16>
    %c0_11 = arith.constant 0 : index
    %c0_12 = arith.constant 0 : index
    %c0_13 = arith.constant 0 : index
    %21 = vector.load %arg3[%c0_11, %c0_12, %c0_13] : memref<2x8x64xbf16, #tpu.memory_space<vmem>>, vector<2x8x16xbf16>
    tpu.vector_store %arg3[%c0_11, %c0_12, %c0_13], %20 {strides = array<i32>} : memref<2x8x64xbf16, #tpu.memory_space<vmem>>, vector<2x8x16xbf16>,
    %c0_14 = arith.constant 0 : index
    %c0_15 = arith.constant 0 : index
    %c16 = arith.constant 16 : index
    %22 = vector.load %arg1[%c0_14, %c0_15, %c16] : memref<2x8x192xbf16, #tpu.memory_space<vmem>>, vector<2x8x16xbf16>
    %c0_16 = arith.constant 0 : index
    %c0_17 = arith.constant 0 : index
    %c80 = arith.constant 80 : index
    %23 = vector.load %arg1[%c0_16, %c0_17, %c80] : memref<2x8x192xbf16, #tpu.memory_space<vmem>>, vector<2x8x16xbf16>
    %c0_18 = arith.constant 0 : index
    %c0_19 = arith.constant 0 : index
    %c144 = arith.constant 144 : index
    %24 = vector.load %arg1[%c0_18, %c0_19, %c144] : memref<2x8x192xbf16, #tpu.memory_space<vmem>>, vector<2x8x16xbf16>
    "tpu.trace_start"() <{level = 10 : i32, message = "bqd,bkd->bqk"}> : () -> ()
    %cst_20 = arith.constant dense<0.000000e+00> : vector<2x8x8xf32>
    %25 = tpu.matmul %22, %23, %cst_20 {dimension_numbers = #tpu.dot_dimension_numbers<[2], [2], [1], [1], [0, 0, 0, 1, 1, 1], [0], [0]>} : vector<2x8x16xbf16>, vector<2x8x16xbf16>, vector<2x8x8xf32> -> vector<2x8x8xf32>
    "tpu.trace_stop"() : () -> ()
    %26 = vector.shape_cast %0 : vector<8x8xf32> to vector<1x8x8xf32>
    %27 = vector.broadcast %26 : vector<1x8x8xf32> to vector<2x8x8xf32>
    %28 = arith.addf %25, %27 : vector<2x8x8xf32>
    %cst_21 = arith.constant dense<0xFF800000> : vector<2x8xf32>
    %29 = vector.multi_reduction <maximumf>, %28, %cst_21 [2] : vector<2x8x8xf32> to vector<2x8xf32>
    %30 = vector.shape_cast %29 : vector<2x8xf32> to vector<2x8x1xf32>
    %31 = vector.broadcast %30 : vector<2x8x1xf32> to vector<2x8x8xf32>
    %32 = arith.subf %28, %31 : vector<2x8x8xf32>
    %33 = math.exp %32 : vector<2x8x8xf32>
    %cst_22 = arith.constant dense<0.000000e+00> : vector<2x8xf32>
    %34 = vector.multi_reduction <add>, %33, %cst_22 [2] : vector<2x8x8xf32> to vector<2x8xf32>
    %35 = vector.shape_cast %34 : vector<2x8xf32> to vector<2x8x1xf32>
    %36 = arith.truncf %33 : vector<2x8x8xf32> to vector<2x8x8xbf16>
    "tpu.trace_start"() <{level = 10 : i32, message = "bqk,bkd->bqd"}> : () -> ()
    %cst_23 = arith.constant dense<0.000000e+00> : vector<2x8x16xf32>
    %37 = tpu.matmul %36, %24, %cst_23 {dimension_numbers = #tpu.dot_dimension_numbers<[2], [1], [1], [2], [0, 0, 0, 1, 1, 2], [0], [0]>} : vector<2x8x8xbf16>, vector<2x8x16xbf16>, vector<2x8x16xf32> -> vector<2x8x16xf32>
    "tpu.trace_stop"() : () -> ()
    %38 = tpu.reciprocal %35 {approx = true} : vector<2x8x1xf32> -> vector<2x8x1xf32>
    %39 = vector.broadcast %38 : vector<2x8x1xf32> to vector<2x8x16xf32>
    %40 = arith.mulf %37, %39 : vector<2x8x16xf32>
    %41 = arith.truncf %40 : vector<2x8x16xf32> to vector<2x8x16xbf16>
    %c0_24 = arith.constant 0 : index
    %c0_25 = arith.constant 0 : index
    %c16_26 = arith.constant 16 : index
    %42 = vector.load %arg3[%c0_24, %c0_25, %c16_26] : memref<2x8x64xbf16, #tpu.memory_space<vmem>>, vector<2x8x16xbf16>
    tpu.vector_store %arg3[%c0_24, %c0_25, %c16_26], %41 {strides = array<i32>} : memref<2x8x64xbf16, #tpu.memory_space<vmem>>, vector<2x8x16xbf16>,
    %c0_27 = arith.constant 0 : index
    %c0_28 = arith.constant 0 : index
    %c32 = arith.constant 32 : index
    %43 = vector.load %arg1[%c0_27, %c0_28, %c32] : memref<2x8x192xbf16, #tpu.memory_space<vmem>>, vector<2x8x16xbf16>
    %c0_29 = arith.constant 0 : index
    %c0_30 = arith.constant 0 : index
    %c96 = arith.constant 96 : index
    %44 = vector.load %arg1[%c0_29, %c0_30, %c96] : memref<2x8x192xbf16, #tpu.memory_space<vmem>>, vector<2x8x16xbf16>
    %c0_31 = arith.constant 0 : index
    %c0_32 = arith.constant 0 : index
    %c160 = arith.constant 160 : index
    %45 = vector.load %arg1[%c0_31, %c0_32, %c160] : memref<2x8x192xbf16, #tpu.memory_space<vmem>>, vector<2x8x16xbf16>
    "tpu.trace_start"() <{level = 10 : i32, message = "bqd,bkd->bqk"}> : () -> ()
    %cst_33 = arith.constant dense<0.000000e+00> : vector<2x8x8xf32>
    %46 = tpu.matmul %43, %44, %cst_33 {dimension_numbers = #tpu.dot_dimension_numbers<[2], [2], [1], [1], [0, 0, 0, 1, 1, 1], [0], [0]>} : vector<2x8x16xbf16>, vector<2x8x16xbf16>, vector<2x8x8xf32> -> vector<2x8x8xf32>
    "tpu.trace_stop"() : () -> ()
    %47 = vector.shape_cast %0 : vector<8x8xf32> to vector<1x8x8xf32>
    %48 = vector.broadcast %47 : vector<1x8x8xf32> to vector<2x8x8xf32>
    %49 = arith.addf %46, %48 : vector<2x8x8xf32>
    %cst_34 = arith.constant dense<0xFF800000> : vector<2x8xf32>
    %50 = vector.multi_reduction <maximumf>, %49, %cst_34 [2] : vector<2x8x8xf32> to vector<2x8xf32>
    %51 = vector.shape_cast %50 : vector<2x8xf32> to vector<2x8x1xf32>
    %52 = vector.broadcast %51 : vector<2x8x1xf32> to vector<2x8x8xf32>
    %53 = arith.subf %49, %52 : vector<2x8x8xf32>
    %54 = math.exp %53 : vector<2x8x8xf32>
    %cst_35 = arith.constant dense<0.000000e+00> : vector<2x8xf32>
    %55 = vector.multi_reduction <add>, %54, %cst_35 [2] : vector<2x8x8xf32> to vector<2x8xf32>
    %56 = vector.shape_cast %55 : vector<2x8xf32> to vector<2x8x1xf32>
    %57 = arith.truncf %54 : vector<2x8x8xf32> to vector<2x8x8xbf16>
    "tpu.trace_start"() <{level = 10 : i32, message = "bqk,bkd->bqd"}> : () -> ()
    %cst_36 = arith.constant dense<0.000000e+00> : vector<2x8x16xf32>
    %58 = tpu.matmul %57, %45, %cst_36 {dimension_numbers = #tpu.dot_dimension_numbers<[2], [1], [1], [2], [0, 0, 0, 1, 1, 2], [0], [0]>} : vector<2x8x8xbf16>, vector<2x8x16xbf16>, vector<2x8x16xf32> -> vector<2x8x16xf32>
    "tpu.trace_stop"() : () -> ()
    %59 = tpu.reciprocal %56 {approx = true} : vector<2x8x1xf32> -> vector<2x8x1xf32>
    %60 = vector.broadcast %59 : vector<2x8x1xf32> to vector<2x8x16xf32>
    %61 = arith.mulf %58, %60 : vector<2x8x16xf32>
    %62 = arith.truncf %61 : vector<2x8x16xf32> to vector<2x8x16xbf16>
    %c0_37 = arith.constant 0 : index
    %c0_38 = arith.constant 0 : index
    %c32_39 = arith.constant 32 : index
    %63 = vector.load %arg3[%c0_37, %c0_38, %c32_39] : memref<2x8x64xbf16, #tpu.memory_space<vmem>>, vector<2x8x16xbf16>
    tpu.vector_store %arg3[%c0_37, %c0_38, %c32_39], %62 {strides = array<i32>} : memref<2x8x64xbf16, #tpu.memory_space<vmem>>, vector<2x8x16xbf16>,
    %c0_40 = arith.constant 0 : index
    %c0_41 = arith.constant 0 : index
    %c48 = arith.constant 48 : index
    %64 = vector.load %arg1[%c0_40, %c0_41, %c48] : memref<2x8x192xbf16, #tpu.memory_space<vmem>>, vector<2x8x16xbf16>
    %c0_42 = arith.constant 0 : index
    %c0_43 = arith.constant 0 : index
    %c112 = arith.constant 112 : index
    %65 = vector.load %arg1[%c0_42, %c0_43, %c112] : memref<2x8x192xbf16, #tpu.memory_space<vmem>>, vector<2x8x16xbf16>
    %c0_44 = arith.constant 0 : index
    %c0_45 = arith.constant 0 : index
    %c176 = arith.constant 176 : index
    %66 = vector.load %arg1[%c0_44, %c0_45, %c176] : memref<2x8x192xbf16, #tpu.memory_space<vmem>>, vector<2x8x16xbf16>
    "tpu.trace_start"() <{level = 10 : i32, message = "bqd,bkd->bqk"}> : () -> ()
    %cst_46 = arith.constant dense<0.000000e+00> : vector<2x8x8xf32>
    %67 = tpu.matmul %64, %65, %cst_46 {dimension_numbers = #tpu.dot_dimension_numbers<[2], [2], [1], [1], [0, 0, 0, 1, 1, 1], [0], [0]>} : vector<2x8x16xbf16>, vector<2x8x16xbf16>, vector<2x8x8xf32> -> vector<2x8x8xf32>
    "tpu.trace_stop"() : () -> ()
    %68 = vector.shape_cast %0 : vector<8x8xf32> to vector<1x8x8xf32>
    %69 = vector.broadcast %68 : vector<1x8x8xf32> to vector<2x8x8xf32>
    %70 = arith.addf %67, %69 : vector<2x8x8xf32>
    %cst_47 = arith.constant dense<0xFF800000> : vector<2x8xf32>
    %71 = vector.multi_reduction <maximumf>, %70, %cst_47 [2] : vector<2x8x8xf32> to vector<2x8xf32>
    %72 = vector.shape_cast %71 : vector<2x8xf32> to vector<2x8x1xf32>
    %73 = vector.broadcast %72 : vector<2x8x1xf32> to vector<2x8x8xf32>
    %74 = arith.subf %70, %73 : vector<2x8x8xf32>
    %75 = math.exp %74 : vector<2x8x8xf32>
    %cst_48 = arith.constant dense<0.000000e+00> : vector<2x8xf32>
    %76 = vector.multi_reduction <add>, %75, %cst_48 [2] : vector<2x8x8xf32> to vector<2x8xf32>
    %77 = vector.shape_cast %76 : vector<2x8xf32> to vector<2x8x1xf32>
    %78 = arith.truncf %75 : vector<2x8x8xf32> to vector<2x8x8xbf16>
    "tpu.trace_start"() <{level = 10 : i32, message = "bqk,bkd->bqd"}> : () -> ()
    %cst_49 = arith.constant dense<0.000000e+00> : vector<2x8x16xf32>
    %79 = tpu.matmul %78, %66, %cst_49 {dimension_numbers = #tpu.dot_dimension_numbers<[2], [1], [1], [2], [0, 0, 0, 1, 1, 2], [0], [0]>} : vector<2x8x8xbf16>, vector<2x8x16xbf16>, vector<2x8x16xf32> -> vector<2x8x16xf32>
    "tpu.trace_stop"() : () -> ()
    %80 = tpu.reciprocal %77 {approx = true} : vector<2x8x1xf32> -> vector<2x8x1xf32>
    %81 = vector.broadcast %80 : vector<2x8x1xf32> to vector<2x8x16xf32>
    %82 = arith.mulf %79, %81 : vector<2x8x16xf32>
    %83 = arith.truncf %82 : vector<2x8x16xf32> to vector<2x8x16xbf16>
    %c0_50 = arith.constant 0 : index
    %c0_51 = arith.constant 0 : index
    %c48_52 = arith.constant 48 : index
    %84 = vector.load %arg3[%c0_50, %c0_51, %c48_52] : memref<2x8x64xbf16, #tpu.memory_space<vmem>>, vector<2x8x16xbf16>
    tpu.vector_store %arg3[%c0_50, %c0_51, %c48_52], %83 {strides = array<i32>} : memref<2x8x64xbf16, #tpu.memory_space<vmem>>, vector<2x8x16xbf16>,
    return
  }
  func.func @transform_0(%arg0: i32) -> (i32, i32, i32) {
    %c0_i32 = arith.constant 0 : i32
    %c0_i32_0 = arith.constant 0 : i32
    %c0_i32_1 = arith.constant 0 : i32
    return %arg0, %c0_i32, %c0_i32_0 : i32, i32, i32
  }
  func.func @transform_1(%arg0: i32) -> (i32, i32) {
    %c0_i32 = arith.constant 0 : i32
    %c0_i32_0 = arith.constant 0 : i32
    %c0_i32_1 = arith.constant 0 : i32
    return %c0_i32, %c0_i32_0 : i32, i32
  }
  func.func @transform_2(%arg0: i32) -> (i32, i32, i32) {
    %c0_i32 = arith.constant 0 : i32
    %c0_i32_0 = arith.constant 0 : i32
    %c0_i32_1 = arith.constant 0 : i32
    return %arg0, %c0_i32, %c0_i32_0 : i32, i32, i32
  }
}

module attributes {stable_mosaic.version = 11 : i64} {
  func.func @_linear_kernel(%arg0: i32, %arg1: i32, %arg2: memref<16x64xf32, #tpu.memory_space<vmem>>, %arg3: memref<64x256xbf16, #tpu.memory_space<vmem>>, %arg4: memref<1x256xf32, #tpu.memory_space<vmem>>, %arg5: memref<1x64xf32, #tpu.memory_space<vmem>>, %arg6: memref<1x64xf32, #tpu.memory_space<vmem>>, %arg7: memref<16x256xbf16, #tpu.memory_space<vmem>>, %arg8: memref<16x64xbf16, #tpu.memory_space<vmem>>) attributes {dimension_semantics = [#tpu.dimension_semantics<parallel>, #tpu.dimension_semantics<arbitrary>], iteration_bounds = array<i64: 1, 1>, scalar_prefetch = 0 : i64, scratch_operands = 1 : i64, tpu.core_type = #tpu.core_type<tc>, window_params = [{transform_indices = @transform_0, window_bounds = array<i64: 16, 64>}, {transform_indices = @transform_1, window_bounds = array<i64: 64, 256>}, {transform_indices = @transform_2, window_bounds = array<i64: 1, 256>}, {pipeline_mode = #tpu.pipeline_mode<synchronous>, transform_indices = @transform_3, window_bounds = array<i64: 1, 64>}, {pipeline_mode = #tpu.pipeline_mode<synchronous>, transform_indices = @transform_4, window_bounds = array<i64: 1, 64>}, {transform_indices = @transform_5, window_bounds = array<i64: 16, 256>}]} {
    %c0_i32 = arith.constant 0 : i32
    %0 = arith.cmpi eq, %arg1, %c0_i32 : i32
    %1 = arith.extui %0 : i1 to i32
    %c0_i32_0 = arith.constant 0 : i32
    %2 = arith.cmpi ne, %1, %c0_i32_0 : i32
    scf.if %2 {
      %c0_10 = arith.constant 0 : index
      %c0_11 = arith.constant 0 : index
      %19 = vector.load %arg2[%c0_10, %c0_11] : memref<16x64xf32, #tpu.memory_space<vmem>>, vector<16x64xf32>
      %cst_12 = arith.constant dense<0.000000e+00> : vector<16xf32>
      %20 = vector.multi_reduction <add>, %19, %cst_12 [1] : vector<16x64xf32> to vector<16xf32>
      %21 = vector.shape_cast %20 : vector<16xf32> to vector<16x1xf32>
      %cst_13 = arith.constant 6.400000e+01 : f32
      %22 = vector.broadcast %cst_13 : f32 to vector<16x1xf32>
      %23 = arith.divf %21, %22 : vector<16x1xf32>
      %24 = vector.broadcast %23 : vector<16x1xf32> to vector<16x64xf32>
      %25 = arith.subf %19, %24 : vector<16x64xf32>
      %26 = arith.mulf %25, %25 : vector<16x64xf32>
      %cst_14 = arith.constant dense<0.000000e+00> : vector<16xf32>
      %27 = vector.multi_reduction <add>, %26, %cst_14 [1] : vector<16x64xf32> to vector<16xf32>
      %28 = vector.shape_cast %27 : vector<16xf32> to vector<16x1xf32>
      %cst_15 = arith.constant 6.400000e+01 : f32
      %29 = vector.broadcast %cst_15 : f32 to vector<16x1xf32>
      %30 = arith.divf %28, %29 : vector<16x1xf32>
      %cst_16 = arith.constant 9.99999974E-6 : f32
      %31 = vector.broadcast %cst_16 : f32 to vector<16x1xf32>
      %32 = arith.addf %30, %31 : vector<16x1xf32>
      %33 = math.rsqrt %32 : vector<16x1xf32>
      %34 = vector.broadcast %33 : vector<16x1xf32> to vector<16x64xf32>
      %35 = arith.mulf %25, %34 : vector<16x64xf32>
      %c0_17 = arith.constant 0 : index
      %c0_18 = arith.constant 0 : index
      %36 = vector.load %arg5[%c0_17, %c0_18] : memref<1x64xf32, #tpu.memory_space<vmem>>, vector<1x64xf32>
      %37 = vector.broadcast %36 : vector<1x64xf32> to vector<16x64xf32>
      %38 = arith.mulf %35, %37 : vector<16x64xf32>
      %c0_19 = arith.constant 0 : index
      %c0_20 = arith.constant 0 : index
      %39 = vector.load %arg6[%c0_19, %c0_20] : memref<1x64xf32, #tpu.memory_space<vmem>>, vector<1x64xf32>
      %40 = vector.broadcast %39 : vector<1x64xf32> to vector<16x64xf32>
      %41 = arith.addf %38, %40 : vector<16x64xf32>
      %42 = arith.truncf %41 : vector<16x64xf32> to vector<16x64xbf16>
      %c0_21 = arith.constant 0 : index
      %c0_22 = arith.constant 0 : index
      %43 = vector.load %arg8[%c0_21, %c0_22] : memref<16x64xbf16, #tpu.memory_space<vmem>>, vector<16x64xbf16>
      tpu.vector_store %arg8[%c0_21, %c0_22], %42 {strides = array<i32>} : memref<16x64xbf16, #tpu.memory_space<vmem>>, vector<16x64xbf16>,
    } else {
    }
    %c0 = arith.constant 0 : index
    %c0_1 = arith.constant 0 : index
    %3 = vector.load %arg8[%c0, %c0_1] : memref<16x64xbf16, #tpu.memory_space<vmem>>, vector<16x64xbf16>
    %c0_2 = arith.constant 0 : index
    %c0_3 = arith.constant 0 : index
    %4 = vector.load %arg3[%c0_2, %c0_3] : memref<64x256xbf16, #tpu.memory_space<vmem>>, vector<64x256xbf16>
    %cst = arith.constant dense<0.000000e+00> : vector<16x256xf32>
    %5 = tpu.matmul %3, %4, %cst {dimension_numbers = #tpu.dot_dimension_numbers<[1], [0], [0], [1], [0, 0, 1, 1], [], []>} : vector<16x64xbf16>, vector<64x256xbf16>, vector<16x256xf32> -> vector<16x256xf32>
    %c0_4 = arith.constant 0 : index
    %c0_5 = arith.constant 0 : index
    %6 = vector.load %arg4[%c0_4, %c0_5] : memref<1x256xf32, #tpu.memory_space<vmem>>, vector<1x256xf32>
    %7 = vector.broadcast %6 : vector<1x256xf32> to vector<16x256xf32>
    %8 = arith.addf %5, %7 : vector<16x256xf32>
    %cst_6 = arith.constant 1.702000e+00 : f32
    %9 = vector.broadcast %cst_6 : f32 to vector<16x256xf32>
    %10 = arith.mulf %9, %8 : vector<16x256xf32>
    %11 = arith.negf %10 : vector<16x256xf32>
    %12 = math.exp %11 : vector<16x256xf32>
    %cst_7 = arith.constant 1.000000e+00 : f32
    %13 = vector.broadcast %cst_7 : f32 to vector<16x256xf32>
    %14 = arith.addf %13, %12 : vector<16x256xf32>
    %15 = arith.divf %13, %14 : vector<16x256xf32>
    %16 = arith.mulf %8, %15 : vector<16x256xf32>
    %17 = arith.truncf %16 : vector<16x256xf32> to vector<16x256xbf16>
    %c0_8 = arith.constant 0 : index
    %c0_9 = arith.constant 0 : index
    %18 = vector.load %arg7[%c0_8, %c0_9] : memref<16x256xbf16, #tpu.memory_space<vmem>>, vector<16x256xbf16>
    tpu.vector_store %arg7[%c0_8, %c0_9], %17 {strides = array<i32>} : memref<16x256xbf16, #tpu.memory_space<vmem>>, vector<16x256xbf16>,
    return
  }
  func.func @transform_0(%arg0: i32, %arg1: i32) -> (i32, i32) {
    %c0_i32 = arith.constant 0 : i32
    %c0_i32_0 = arith.constant 0 : i32
    return %arg0, %c0_i32 : i32, i32
  }
  func.func @transform_1(%arg0: i32, %arg1: i32) -> (i32, i32) {
    %c0_i32 = arith.constant 0 : i32
    %c0_i32_0 = arith.constant 0 : i32
    return %c0_i32, %arg1 : i32, i32
  }
  func.func @transform_2(%arg0: i32, %arg1: i32) -> (i32, i32) {
    %c0_i32 = arith.constant 0 : i32
    %c0_i32_0 = arith.constant 0 : i32
    return %c0_i32, %arg1 : i32, i32
  }
  func.func @transform_3(%arg0: i32, %arg1: i32) -> (i32, i32) {
    %c0_i32 = arith.constant 0 : i32
    %c0_i32_0 = arith.constant 0 : i32
    %c0_i32_1 = arith.constant 0 : i32
    return %c0_i32, %c0_i32_0 : i32, i32
  }
  func.func @transform_4(%arg0: i32, %arg1: i32) -> (i32, i32) {
    %c0_i32 = arith.constant 0 : i32
    %c0_i32_0 = arith.constant 0 : i32
    %c0_i32_1 = arith.constant 0 : i32
    return %c0_i32, %c0_i32_0 : i32, i32
  }
  func.func @transform_5(%arg0: i32, %arg1: i32) -> (i32, i32) {
    %c0_i32 = arith.constant 0 : i32
    return %arg0, %arg1 : i32, i32
  }
}

module attributes {stable_mosaic.version = 11 : i64} {
  func.func @_linear_kernel(%arg0: i32, %arg1: i32, %arg2: memref<16x256xbf16, #tpu.memory_space<vmem>>, %arg3: memref<256x64xbf16, #tpu.memory_space<vmem>>, %arg4: memref<1x64xf32, #tpu.memory_space<vmem>>, %arg5: memref<16x64xf32, #tpu.memory_space<vmem>>, %arg6: memref<16x64xf32, #tpu.memory_space<vmem>>) attributes {dimension_semantics = [#tpu.dimension_semantics<parallel>, #tpu.dimension_semantics<arbitrary>], iteration_bounds = array<i64: 1, 1>, scalar_prefetch = 0 : i64, scratch_operands = 0 : i64, tpu.core_type = #tpu.core_type<tc>, window_params = [{transform_indices = @transform_0, window_bounds = array<i64: 16, 256>}, {transform_indices = @transform_1, window_bounds = array<i64: 256, 64>}, {transform_indices = @transform_2, window_bounds = array<i64: 1, 64>}, {transform_indices = @transform_3, window_bounds = array<i64: 16, 64>}, {transform_indices = @transform_4, window_bounds = array<i64: 16, 64>}]} {
    %c0 = arith.constant 0 : index
    %c0_0 = arith.constant 0 : index
    %0 = vector.load %arg2[%c0, %c0_0] : memref<16x256xbf16, #tpu.memory_space<vmem>>, vector<16x256xbf16>
    %c0_1 = arith.constant 0 : index
    %c0_2 = arith.constant 0 : index
    %1 = vector.load %arg3[%c0_1, %c0_2] : memref<256x64xbf16, #tpu.memory_space<vmem>>, vector<256x64xbf16>
    %cst = arith.constant dense<0.000000e+00> : vector<16x64xf32>
    %2 = tpu.matmul %0, %1, %cst {dimension_numbers = #tpu.dot_dimension_numbers<[1], [0], [0], [1], [0, 0, 1, 1], [], []>} : vector<16x256xbf16>, vector<256x64xbf16>, vector<16x64xf32> -> vector<16x64xf32>
    %c0_3 = arith.constant 0 : index
    %c0_4 = arith.constant 0 : index
    %3 = vector.load %arg4[%c0_3, %c0_4] : memref<1x64xf32, #tpu.memory_space<vmem>>, vector<1x64xf32>
    %4 = vector.broadcast %3 : vector<1x64xf32> to vector<16x64xf32>
    %5 = arith.addf %2, %4 : vector<16x64xf32>
    %c0_5 = arith.constant 0 : index
    %c0_6 = arith.constant 0 : index
    %6 = vector.load %arg5[%c0_5, %c0_6] : memref<16x64xf32, #tpu.memory_space<vmem>>, vector<16x64xf32>
    %7 = arith.addf %5, %6 : vector<16x64xf32>
    %c0_7 = arith.constant 0 : index
    %c0_8 = arith.constant 0 : index
    %8 = vector.load %arg6[%c0_7, %c0_8] : memref<16x64xf32, #tpu.memory_space<vmem>>, vector<16x64xf32>
    tpu.vector_store %arg6[%c0_7, %c0_8], %7 {strides = array<i32>} : memref<16x64xf32, #tpu.memory_space<vmem>>, vector<16x64xf32>,
    return
  }
  func.func @transform_0(%arg0: i32, %arg1: i32) -> (i32, i32) {
    %c0_i32 = arith.constant 0 : i32
    %c0_i32_0 = arith.constant 0 : i32
    return %arg0, %c0_i32 : i32, i32
  }
  func.func @transform_1(%arg0: i32, %arg1: i32) -> (i32, i32) {
    %c0_i32 = arith.constant 0 : i32
    %c0_i32_0 = arith.constant 0 : i32
    return %c0_i32, %arg1 : i32, i32
  }
  func.func @transform_2(%arg0: i32, %arg1: i32) -> (i32, i32) {
    %c0_i32 = arith.constant 0 : i32
    %c0_i32_0 = arith.constant 0 : i32
    return %c0_i32, %arg1 : i32, i32
  }
  func.func @transform_3(%arg0: i32, %arg1: i32) -> (i32, i32) {
    %c0_i32 = arith.constant 0 : i32
    return %arg0, %arg1 : i32, i32
  }
  func.func @transform_4(%arg0: i32, %arg1: i32) -> (i32, i32) {
    %c0_i32 = arith.constant 0 : i32
    return %arg0, %arg1 : i32, i32
  }
}

</mosaic_0001>

<bundles_post_ra>
// kernel: transformer_forward.10
= control target key start
LH: loop header
LB: loop body
LE: loop exit
PB: predicated region body
PF: predicated region fallthrough
CT: control target
= control target key end

     0   :  { %vm27_vm0 = vcmask 523264   ;;  %v257_v22 = vmov 0   ;;  %vm81_vm1 = vcmask 519168   ;;  %v96_v42 = vlaneseq  ;;  %s338_s0 = inlined_call_operand.vmem [shape: f32[16,64], index: 0, kind: input, shape index: {}]   ;;  %s339_s1 = inlined_call_operand.vmem [shape: bf16[64,192], index: 1, kind: input, shape index: {}]   ;;  %s340_s3 = inlined_call_operand.vmem [shape: f32[1,64], index: 3, kind: input, shape index: {}]   ;;  %s341_s4 = inlined_call_operand.vmem [shape: f32[1,64], index: 4, kind: input, shape index: {}]   ;;  %s342_s2 = inlined_call_operand.vmem [shape: f32[1,192], index: 2, kind: input, shape index: {}]   ;;  %s343_s5 = inlined_call_operand.vmem [shape: bf16[16,192], index: 5, kind: output, shape index: {}]  }
   0x1   :  { %v25_v0 = vld [vmem:[%s338_s0] sm:$0xff]  ;;  %v26_v1 = vld [vmem:[%s338_s0 + $0x8] sm:$0xff]  ;;  %v240_v14 = vld [vmem:[%s339_s1 + $0x34] ss:$8 sps:$4 sm:$0xff]   ;;  %187 = vmatprep.mubr.bf16.mxu0 %v257_v22  ;;  %vm210_vm2 = vcmask 1043456   ;;  %vm211_vm3 = vcmask 523268  }
   0x2   :  { %v28_v2 = vsel %vm27_vm0, %v25_v0, 0.0  ;;  %v31_v3 = vsel %vm27_vm0, %v26_v1, 0.0  ;;  %v242_v15 = vld [vmem:[%s339_s1 + $0x30] ss:$8 sps:$4 sm:$0xff]   ;;  %163 = vmatprep.subr.bf16.mxu0 %v240_v14  ;;  %v243_v16 = vld [vmem:[%s339_s1 + $0x24] ss:$8 sps:$4 sm:$0xff]   ;;  %vm212_vm4 = vmor %vm211_vm3, %vm210_vm2 }
   0x3   :  { %29 = vadd.xlane.f32.xlu0 %v28_v2  ;;  %164 = vmatpush1.bf16.msra.mxu0 %v242_v15  ;;  %v245_v17 = vld [vmem:[%s339_s1 + $0x20] ss:$8 sps:$4 sm:$0xff]   ;;  %v246_v18 = vld [vmem:[%s339_s1 + $0x14] ss:$8 sps:$4 sm:$0xff]   ;;  %v248_v19 = vld [vmem:[%s339_s1 + $0x10] ss:$8 sps:$4 sm:$0xff]  }
   0x4   :  { %165 = vmatprep.subr.bf16.mxu0 %v243_v16  ;;  %v249_v20 = vld [vmem:[%s339_s1 + $0x4] ss:$8 sps:$4 sm:$0xff]   ;;  %v251_v21 = vld [vmem:[%s339_s1] ss:$8 sps:$4 sm:$0xff]   ;;  %v97_v43 = vshrl.u32 %v96_v42, 7 }
   0x5   :  { %v219_v30 = vld [vmem:[%s340_s3] ss:$0 sm:$0xff] }
   0x6   :  { %v220_v32 = vld [vmem:[%s341_s4] ss:$0 sm:$0xff]  ;;  %v98_v44 = vsub.s32 0, %v97_v43  ;;  %v102_v45 = vsub.s32 1, %v97_v43 }
   0x7   :  { %32 = vadd.xlane.f32.xlu0 %v31_v3  ;;  %166 = vmatpush1.bf16.msra.mxu0 %v245_v17  ;;  %v94_v46 = vld [vmem:[%s342_s2] sm:$0x3] }
   0x8   :  { %167 = vmatprep.subr.bf16.mxu0 %v246_v18  ;;  %v99_v47 = vrot.slane %v94_v46, %v98_v44  ;;  %v103_v48 = vrot.slane %v94_v46, %v102_v45 }
   0xb   :  { %168 = vmatpush1.bf16.msra.mxu0 %v248_v19 }
   0xc   :  { %169 = vmatprep.subr.bf16.mxu0 %v249_v20 }
   0xf   :  { %170 = vmatpush1.bf16.msra.mxu0 %v251_v21 }
  0x8c   :  { %v30_v4 = vpop.xlane.xlu0 %29 }
  0x8d   :  { %v35_v5 = vmul.f32 0.015625, %v30_v4 }
  0x8f   :  { %v37_v6 = vsub.f32 %v25_v0, %v35_v5 }
  0x90   :  { %v33_v7 = vpop.xlane.xlu0 %32 }
  0x91   :  { %v36_v8 = vmul.f32 0.015625, %v33_v7  ;;  %v39_v9 = vmul.f32 %v37_v6, %v37_v6 }
  0x93   :  { %v38_v10 = vsub.f32 %v26_v1, %v36_v8  ;;  %v41_v11 = vsel %vm27_vm0, %v39_v9, 0.0 }
  0x94   :  { %42 = vadd.xlane.f32.xlu1 %v41_v11 }
  0x95   :  { %v40_v12 = vmul.f32 %v38_v10, %v38_v10 }
  0x97   :  { %v44_v13 = vsel %vm27_vm0, %v40_v12, 0.0 }
  0x98   :  { %45 = vadd.xlane.f32.xlu1 %v44_v13 }
 0x11d   :  { %v43_v23 = vpop.xlane.xlu1 %42 }
 0x11e   :  { %v47_v24 = vmul.f32 0.015625, %v43_v23 }
 0x120   :  { %v49_v25 = vadd.f32 1e-05, %v47_v24 }
 0x121   :  { %v46_v26 = vpop.xlane.xlu1 %45 }
 0x122   :  { %253 = vrsqrt.f32 %v49_v25  ;;  %v48_v27 = vmul.f32 0.015625, %v46_v26 }
 0x124   :  { %v50_v28 = vadd.f32 1e-05, %v48_v27 }
 0x126   :  { %255 = vrsqrt.f32 %v50_v28 }
 0x12f   :  { %v254_v29 = vpop.eup %253 }
 0x130   :  { %v53_v31 = vmul.f32 %v254_v29, %v37_v6 }
 0x132   :  { %v62_v33 = vmul.f32 %v219_v30, %v53_v31 }
 0x133   :  { %v256_v34 = vpop.eup %255 }
 0x134   :  { %v71_v35 = vadd.f32 %v220_v32, %v62_v33  ;;  %v54_v36 = vmul.f32 %v256_v34, %v38_v10 }
 0x136   :  { %v235_v37 = vpack.c.bf16 %v71_v35, %v71_v35  ;;  %v63_v38 = vmul.f32 %v219_v30, %v54_v36 }
 0x138   :  { %82 = vst.msk [vmem:[#allocation2] sm:$0xf] %vm81_vm1, %v235_v37  ;;  %v72_v39 = vadd.f32 %v220_v32, %v63_v38 }
 0x13a   :  { %v236_v40 = vpack.c.bf16 %v72_v39, %v72_v39 }
 0x13c   :  { %83 = vst.msk [vmem:[#allocation2 + $0x4] sm:$0xf] %vm81_vm1, %v236_v40 }
 0x143   :  { %v252_v41 = vld [vmem:[#allocation2] sm:$0xff]  }
 0x144   :  { %232 = vmatmul.mubr.msk.bf16.vlgmr.msra.gmra.mxu0 %vm27_vm0, %v252_v41 }
 0x204   :  { %v189_v49 = vpop.f32.mrf.mxu0 }
 0x205   :  { %v190_v51 = vadd.f32 %v189_v49, %v99_v47 }
 0x206   :  { %v191_v50 = vpop.f32.mrf.mxu0 }
 0x207   :  { %v192_v52 = vadd.f32 %v191_v50, %v103_v48 }
 0x208   :  { %v193_v53 = vpop.f32.mrf.mxu0 }
 0x209   :  { %v237_v54 = vpack.c.bf16 %v192_v52, %v190_v51  ;;  %v194_v56 = vadd.f32 %v193_v53, %v99_v47 }
 0x20a   :  { %v195_v55 = vpop.f32.mrf.mxu0 }
 0x20b   :  { %213 = vst.msk [vmem:[%s343_s5] sm:$0xff] %vm212_vm4, %v237_v54  ;;  %v196_v57 = vadd.f32 %v195_v55, %v103_v48 }
 0x20d   :  { %v238_v58 = vpack.c.bf16 %v196_v57, %v194_v56 }
 0x20f   :  { %214 = vst.msk [vmem:[%s343_s5 + $0x8] sm:$0xff] %vm212_vm4, %v238_v58 }

// kernel: transformer_forward.12
= control target key start
LH: loop header
LB: loop body
LE: loop exit
PB: predicated region body
PF: predicated region fallthrough
CT: control target
= control target key end

     0   :  { %v150_v0 = vmov 0.0   ;;  %vm151_vm0 = vmmov 0   ;;  %vm64_vm1 = vcmask 523264   ;;  %s210_s1 = inlined_call_operand.vmem [shape: bf16[64,64], index: 1, kind: input, shape index: {}]   ;;  %s211_s0 = inlined_call_operand.vmem [shape: bf16[16,64], index: 0, kind: input, shape index: {}]   ;;  %s212_s2 = inlined_call_operand.vmem [shape: f32[1,64], index: 2, kind: input, shape index: {}]   ;;  %s213_s3 = inlined_call_operand.vmem [shape: f32[16,64], index: 3, kind: input, shape index: {}]   ;;  %s214_s4 = inlined_call_operand.vmem [shape: f32[16,64], index: 4, kind: output, shape index: {}]  }
   0x1   :  { %131 = vmatprep.subr.bf16.mxu0 %v150_v0  ;;  %v145_v1 = vld [vmem:[%s210_s1 + $0x18] sm:$0xff]   ;;  %139 = vmatprep.mubr.msk.bf16.mxu0 %vm151_vm0, %v150_v0  ;;  %v146_v2 = vld [vmem:[%s210_s1 + $0x10] sm:$0xff]   ;;  %v147_v3 = vld [vmem:[%s210_s1 + $0x8] sm:$0xff]  }
   0x2   :  { %132 = vmatpush3.bf16.msra.mxu0 %v145_v1  ;;  %v148_v4 = vld [vmem:[%s210_s1] sm:$0xff]   ;;  %v110_v13 = vld [vmem:[%s213_s3 + $0x8] sm:$0xff] }
   0x3   :  { %133 = vmatprep.subr.bf16.mxu0 %v150_v0  ;;  %v149_v5 = vld [vmem:[%s211_s0] sm:$0xff]  }
   0x4   :  { %v119_v6 = vld [vmem:[%s212_s2] ss:$0 sm:$0xff] }
   0x5   :  { %v109_v8 = vld [vmem:[%s213_s3] sm:$0xff] }
   0x6   :  { %134 = vmatpush3.bf16.msra.mxu0 %v146_v2 }
   0x7   :  { %135 = vmatprep.subr.bf16.mxu0 %v150_v0 }
   0xa   :  { %136 = vmatpush3.bf16.msra.mxu0 %v147_v3 }
   0xb   :  { %137 = vmatprep.subr.bf16.mxu0 %v150_v0 }
   0xe   :  { %138 = vmatpush3.bf16.msra.mxu0 %v148_v4 }
  0x11   :  { %140 = vmatmul.mubr.msk.bf16.vlgmr.msra.gmra.mxu0 %vm64_vm1, %v149_v5 }
  0xd1   :  { %v102_v7 = vpop.f32.mrf.mxu0 }
  0xd2   :  { %v103_v9 = vadd.f32 %v119_v6, %v102_v7 }
  0xd3   :  { %v141_v10 = vpop.f32.mrf.mxu0 }
  0xd4   :  { %v111_v11 = vadd.f32 %v109_v8, %v103_v9 }
  0xd5   :  { %v105_v12 = vpop.f32.mrf.mxu0 }
  0xd6   :  { %113 = vst.msk [vmem:[%s214_s4] sm:$0xff] %vm64_vm1, %v111_v11  ;;  %v106_v14 = vadd.f32 %v119_v6, %v105_v12 }
  0xd7   :  { %v142_v15 = vpop.f32.mrf.mxu0 }
  0xd8   :  { %v112_v16 = vadd.f32 %v110_v13, %v106_v14 }
  0xda   :  { %114 = vst.msk [vmem:[%s214_s4 + $0x8] sm:$0xff] %vm64_vm1, %v112_v16 }

// kernel: transformer_forward.13
= control target key start
LH: loop header
LB: loop body
LE: loop exit
PB: predicated region body
PF: predicated region fallthrough
CT: control target
= control target key end

     0   :  { %vm27_vm0 = vcmask 523264   ;;  %v306_v22 = vmov 0   ;;  %vm81_vm1 = vcmask 519168   ;;  %v96_v42 = vlaneseq  ;;  %s387_s0 = inlined_call_operand.vmem [shape: f32[16,64], index: 0, kind: input, shape index: {}]   ;;  %s388_s1 = inlined_call_operand.vmem [shape: bf16[64,256], index: 1, kind: input, shape index: {}]   ;;  %s389_s3 = inlined_call_operand.vmem [shape: f32[1,64], index: 3, kind: input, shape index: {}]   ;;  %s390_s4 = inlined_call_operand.vmem [shape: f32[1,64], index: 4, kind: input, shape index: {}]   ;;  %s391_s2 = inlined_call_operand.vmem [shape: f32[1,256], index: 2, kind: input, shape index: {}]   ;;  %s392_s5 = inlined_call_operand.vmem [shape: bf16[16,256], index: 5, kind: output, shape index: {}]  }
   0x1   :  { %v25_v0 = vld [vmem:[%s387_s0] sm:$0xff]  ;;  %v26_v1 = vld [vmem:[%s387_s0 + $0x8] sm:$0xff]  ;;  %v273_v14 = vld [vmem:[%s388_s1 + $0x34] ss:$8 sps:$4 sm:$0xff]   ;;  %187 = vmatprep.mubr.bf16.mxu0 %v306_v22 }
   0x2   :  { %v28_v2 = vsel %vm27_vm0, %v25_v0, 0.0  ;;  %v31_v3 = vsel %vm27_vm0, %v26_v1, 0.0  ;;  %v275_v15 = vld [vmem:[%s388_s1 + $0x30] ss:$8 sps:$4 sm:$0xff]   ;;  %163 = vmatprep.subr.bf16.mxu0 %v273_v14  ;;  %v276_v16 = vld [vmem:[%s388_s1 + $0x24] ss:$8 sps:$4 sm:$0xff]  }
   0x3   :  { %29 = vadd.xlane.f32.xlu0 %v28_v2  ;;  %164 = vmatpush1.bf16.msra.mxu0 %v275_v15  ;;  %v278_v17 = vld [vmem:[%s388_s1 + $0x20] ss:$8 sps:$4 sm:$0xff]   ;;  %v279_v18 = vld [vmem:[%s388_s1 + $0x14] ss:$8 sps:$4 sm:$0xff]   ;;  %v281_v19 = vld [vmem:[%s388_s1 + $0x10] ss:$8 sps:$4 sm:$0xff]  }
   0x4   :  { %165 = vmatprep.subr.bf16.mxu0 %v276_v16  ;;  %v282_v20 = vld [vmem:[%s388_s1 + $0x4] ss:$8 sps:$4 sm:$0xff]   ;;  %v284_v21 = vld [vmem:[%s388_s1] ss:$8 sps:$4 sm:$0xff]   ;;  %v97_v43 = vshrl.u32 %v96_v42, 7 }
   0x5   :  { %v248_v30 = vld [vmem:[%s389_s3] ss:$0 sm:$0xff] }
   0x6   :  { %v249_v32 = vld [vmem:[%s390_s4] ss:$0 sm:$0xff]  ;;  %v98_v44 = vsub.s32 0, %v97_v43  ;;  %v102_v46 = vsub.s32 1, %v97_v43 }
   0x7   :  { %32 = vadd.xlane.f32.xlu0 %v31_v3  ;;  %166 = vmatpush1.bf16.msra.mxu0 %v278_v17  ;;  %v94_v45 = vld [vmem:[%s391_s2] sm:$0x3] }
   0x8   :  { %167 = vmatprep.subr.bf16.mxu0 %v279_v18  ;;  %v99_v47 = vrot.slane %v94_v45, %v98_v44  ;;  %v103_v48 = vrot.slane %v94_v45, %v102_v46 }
   0xb   :  { %168 = vmatpush1.bf16.msra.mxu0 %v281_v19 }
   0xc   :  { %169 = vmatprep.subr.bf16.mxu0 %v282_v20 }
   0xf   :  { %170 = vmatpush1.bf16.msra.mxu0 %v284_v21 }
  0x8c   :  { %v30_v4 = vpop.xlane.xlu0 %29 }
  0x8d   :  { %v35_v5 = vmul.f32 0.015625, %v30_v4 }
  0x8f   :  { %v37_v6 = vsub.f32 %v25_v0, %v35_v5 }
  0x90   :  { %v33_v7 = vpop.xlane.xlu0 %32 }
  0x91   :  { %v36_v8 = vmul.f32 0.015625, %v33_v7  ;;  %v39_v9 = vmul.f32 %v37_v6, %v37_v6 }
  0x93   :  { %v38_v10 = vsub.f32 %v26_v1, %v36_v8  ;;  %v41_v11 = vsel %vm27_vm0, %v39_v9, 0.0 }
  0x94   :  { %42 = vadd.xlane.f32.xlu1 %v41_v11 }
  0x95   :  { %v40_v12 = vmul.f32 %v38_v10, %v38_v10 }
  0x97   :  { %v44_v13 = vsel %vm27_vm0, %v40_v12, 0.0 }
  0x98   :  { %45 = vadd.xlane.f32.xlu1 %v44_v13 }
 0x11d   :  { %v43_v23 = vpop.xlane.xlu1 %42 }
 0x11e   :  { %v47_v24 = vmul.f32 0.015625, %v43_v23 }
 0x120   :  { %v49_v25 = vadd.f32 1e-05, %v47_v24 }
 0x121   :  { %v46_v26 = vpop.xlane.xlu1 %45 }
 0x122   :  { %286 = vrsqrt.f32 %v49_v25  ;;  %v48_v27 = vmul.f32 0.015625, %v46_v26 }
 0x124   :  { %v50_v28 = vadd.f32 1e-05, %v48_v27 }
 0x126   :  { %288 = vrsqrt.f32 %v50_v28 }
 0x12f   :  { %v287_v29 = vpop.eup %286 }
 0x130   :  { %v53_v31 = vmul.f32 %v287_v29, %v37_v6 }
 0x132   :  { %v62_v33 = vmul.f32 %v248_v30, %v53_v31 }
 0x133   :  { %v289_v34 = vpop.eup %288 }
 0x134   :  { %v71_v35 = vadd.f32 %v249_v32, %v62_v33  ;;  %v54_v36 = vmul.f32 %v289_v34, %v38_v10 }
 0x136   :  { %v268_v37 = vpack.c.bf16 %v71_v35, %v71_v35  ;;  %v63_v38 = vmul.f32 %v248_v30, %v54_v36 }
 0x138   :  { %82 = vst.msk [vmem:[#allocation2] sm:$0xf] %vm81_vm1, %v268_v37  ;;  %v72_v39 = vadd.f32 %v249_v32, %v63_v38 }
 0x13a   :  { %v269_v40 = vpack.c.bf16 %v72_v39, %v72_v39 }
 0x13c   :  { %83 = vst.msk [vmem:[#allocation2 + $0x4] sm:$0xf] %vm81_vm1, %v269_v40 }
 0x143   :  { %v285_v41 = vld [vmem:[#allocation2] sm:$0xff]  }
 0x144   :  { %261 = vmatmul.mubr.msk.bf16.vlgmr.msra.gmra.mxu0 %vm27_vm0, %v285_v41 }
 0x204   :  { %v189_v49 = vpop.f32.mrf.mxu0 }
 0x205   :  { %v190_v50 = vadd.f32 %v189_v49, %v99_v47 }
 0x206   :  { %v191_v51 = vpop.f32.mrf.mxu0 }
 0x207   :  { %v262_v52 = vmul.f32 -1.702, %v190_v50  ;;  %v192_v53 = vadd.f32 %v191_v51, %v103_v48 }
 0x208   :  { %v193_v54 = vpop.f32.mrf.mxu0 }
 0x209   :  { %v206_v55 = vmul.f32 1.442695, %v262_v52  ;;  %v263_v56 = vmul.f32 -1.702, %v192_v53  ;;  %v194_v57 = vadd.f32 %v193_v54, %v99_v47 }
 0x20a   :  { %v195_v58 = vpop.f32.mrf.mxu0 }
 0x20b   :  { %290 = vpow2.f32 %v206_v55  ;;  %v208_v59 = vmul.f32 1.442695, %v263_v56  ;;  %v264_v60 = vmul.f32 -1.702, %v194_v57  ;;  %v196_v61 = vadd.f32 %v195_v58, %v103_v48 }
 0x20d   :  { %292 = vpow2.f32 %v208_v59  ;;  %v210_v62 = vmul.f32 1.442695, %v264_v60  ;;  %v265_v63 = vmul.f32 -1.702, %v196_v61 }
 0x20f   :  { %294 = vpow2.f32 %v210_v62  ;;  %v212_v0 = vmul.f32 1.442695, %v265_v63 }
 0x211   :  { %296 = vpow2.f32 %v212_v0 }
 0x218   :  { %v291_v1 = vpop.eup %290 }
 0x219   :  { %v214_v2 = vadd.f32 1.0, %v291_v1 }
 0x21a   :  { %v293_v3 = vpop.eup %292 }
 0x21b   :  { %298 = vrcp.f32 %v214_v2  ;;  %v215_v4 = vadd.f32 1.0, %v293_v3 }
 0x21c   :  { %v295_v5 = vpop.eup %294 }
 0x21d   :  { %300 = vrcp.f32 %v215_v4  ;;  %v216_v6 = vadd.f32 1.0, %v295_v5 }
 0x21e   :  { %v297_v7 = vpop.eup %296 }
 0x21f   :  { %302 = vrcp.f32 %v216_v6  ;;  %v217_v8 = vadd.f32 1.0, %v297_v7 }
 0x221   :  { %304 = vrcp.f32 %v217_v8 }
 0x228   :  { %v299_v9 = vpop.eup %298 }
 0x229   :  { %v226_v11 = vmul.f32 %v299_v9, %v190_v50 }
 0x22a   :  { %v301_v10 = vpop.eup %300 }
 0x22b   :  { %v227_v12 = vmul.f32 %v301_v10, %v192_v53 }
 0x22c   :  { %v303_v13 = vpop.eup %302 }
 0x22d   :  { %v270_v14 = vpack.c.bf16 %v227_v12, %v226_v11  ;;  %v228_v16 = vmul.f32 %v303_v13, %v194_v57 }
 0x22e   :  { %v305_v15 = vpop.eup %304 }
 0x22f   :  { %242 = vst [vmem:[%s392_s5] sm:$0xff] %v270_v14  ;;  %v229_v17 = vmul.f32 %v305_v15, %v196_v61 }
 0x231   :  { %v271_v18 = vpack.c.bf16 %v229_v17, %v228_v16 }
 0x233   :  { %243 = vst [vmem:[%s392_s5 + $0x8] sm:$0xff] %v271_v18 }

// kernel: transformer_forward.11
= control target key start
LH: loop header
LB: loop body
LE: loop exit
PB: predicated region body
PF: predicated region fallthrough
CT: control target
= control target key end

     0   :  { %v1231_v2 = vmov 0.0   ;;  %vm1232_vm0 = vmmov 0   ;;  %s1233_s13 = smov 64   ;;  %vm22_vm1 = vcmask 130048   ;;  %s1234_s16 = smov 48   ;;  %vm120_vm2 = vcmask 64512   ;;  %s1498_s0 = inlined_call_operand.vmem [shape: bf16[2,8,192], index: 0, kind: input, shape index: {}]   ;;  %s1499_s1 = inlined_call_operand.vmem [shape: f32[8,8], index: 1, kind: input, shape index: {}]   ;;  %s1500_s2 = inlined_call_operand.vmem [shape: bf16[2,8,64], index: 2, kind: output, shape index: {}]  }
   0x1   :  { %v13_v0 = vld [vmem:[%s1498_s0] sm:$0xf]  ;;  %v14_v1 = vld [vmem:[%s1498_s0 + $0x8] sm:$0xf]  ;;  %1080 = vmatprep.subr.bf16.mxu0 %v1231_v2  ;;  %1086 = vmatprep.subr.bf16.mxu1 %v1231_v2  ;;  %s1235_s17 = smov 112   ;;  %vm144_vm3 = vcmask 1043456  }
   0x2   :  { %v1006_v3 = vcombine.low %v13_v0, %v13_v0  ;;  %1082 = vmatprep.mubr.msk.bf16.mxu0 %vm1232_vm0, %v1231_v2  ;;  %1088 = vmatprep.mubr.msk.bf16.mxu1 %vm1232_vm0, %v1231_v2  ;;  %v1008_v4 = vcombine.low %v14_v1, %v14_v1  ;;  %v1187_v9 = vld [vmem:[%s1498_s0] ss:$0 sps:$4 sm:$0xff]   ;;  %v1188_v10 = vld [vmem:[%s1498_s0 + $0x8] ss:$0 sps:$4 sm:$0xff]   ;;  %v15_v24 = vld [vmem:[%s1498_s0 + $0x4] sm:$0xf] }
   0x3   :  { %v1289_v11 = vld [vmem:[%s1499_s1] sm:$0xff]  ;;  %v16_v25 = vld [vmem:[%s1498_s0 + $0xc] sm:$0xf]  ;;  %v146_v26 = vsel %vm144_vm3, %v15_v24, 0  ;;  %s1236_s3 = smov 32   ;;  %s1237_s6 = smov 96  }
   0x4   :  { %20 = vrot.lane.b32.xlu0 %v1006_v3, %s1233_s13  ;;  %v192_v27 = vsel %vm144_vm3, %v16_v25, 0  ;;  %v1189_v28 = vld [vmem:[%s1498_s0 + $0x4] ss:$0 sps:$4 sm:$0xff]   ;;  %s1238_s11 = smov 16   ;;  %s1239_s14 = smov 80   ;;  %vm240_vm4 = vcmask 125952  }
   0x5   :  { %vm493_vm5 = vcmask 257152   ;;  %vm746_vm6 = vcmask 388352   ;;  %vm999_vm7 = vcmask 519552  }
   0x8   :  { %72 = vrot.lane.b32.xlu0 %v1008_v4, %s1233_s13  ;;  %v1190_v4 = vld [vmem:[%s1498_s0 + $0xc] ss:$0 sps:$4 sm:$0xff]  }
   0xc   :  { %252 = vrot.lane.b32.xlu0 %v1187_v9, %s1234_s16 }
  0x10   :  { %250 = vrot.lane.b32.xlu0 %v1187_v9, %s1235_s17 }
  0x14   :  { %303 = vrot.lane.b32.xlu0 %v1188_v10, %s1235_s17 }
  0x18   :  { %376 = vrot.lane.b32.xlu0 %v1189_v28, %s1235_s17 }
  0x76   :  { %v21_v5 = vpop.permute.xlu0 %20 }
  0x77   :  { %v27_v6 = vsel %vm22_vm1, %v21_v5, 0  ;;  %v1191_v5 = vld [vmem:[%s1498_s0] ss:$0 sps:$4 sm:$0xff]  }
  0x78   :  { %1081 = vmatpush3.bf16.xpose.msra.mxu0 %v27_v6  ;;  %v1192_v6 = vld [vmem:[%s1498_s0 + $0x8] ss:$0 sps:$4 sm:$0xff]  }
  0x79   :  { %1092 = vmatprep.subr.bf16.mxu0 %v1231_v2 }
  0x7a   :  { %v73_v7 = vpop.permute.xlu0 %72 }
  0x7b   :  { %v78_v8 = vsel %vm22_vm1, %v73_v7, 0 }
  0x7c   :  { %1087 = vmatpush3.bf16.xpose.msra.mxu1 %v78_v8 }
  0x7d   :  { %1098 = vmatprep.subr.bf16.mxu1 %v1231_v2 }
  0x7e   :  { %v253_v35 = vpop.permute.xlu0 %252 }
  0x7f   :  { %1083 = vmatmul.mubr.msk.bf16.vlgmr.msra.gmra.mxu0 %vm22_vm1, %v13_v0  ;;  %v258_v37 = vsel %vm22_vm1, %v253_v35, 0 }
  0x80   :  { %1094 = vmatprep.mubr.msk.bf16.mxu0 %vm1232_vm0, %v1231_v2  ;;  %1093 = vmatpush3.bf16.msra.mxu0 %v146_v26 }
  0x81   :  { %1104 = vmatprep.subr.bf16.mxu0 %v1231_v2 }
  0x82   :  { %v251_v43 = vpop.permute.xlu0 %250 }
  0x83   :  { %1089 = vmatmul.mubr.msk.bf16.vlgmr.msra.gmra.mxu1 %vm22_vm1, %v14_v1 }
  0x84   :  { %1100 = vmatprep.mubr.msk.bf16.mxu1 %vm1232_vm0, %v1231_v2  ;;  %1099 = vmatpush3.bf16.msra.mxu1 %v192_v27 }
  0x85   :  { %1110 = vmatprep.subr.bf16.mxu1 %v1231_v2 }
  0x86   :  { %v304_v44 = vpop.permute.xlu0 %303 }
  0x8a   :  { %v377_v45 = vpop.permute.xlu0 %376 }
  0x8b   :  { %v382_v46 = vsel %vm144_vm3, %v377_v45, 0 }
 0x13f   :  { %v63_v12 = vpop.f32.mrf.mxu0 }
 0x140   :  { %v64_v13 = vadd.f32 %v63_v12, %v1289_v11 }
 0x141   :  { %v1084_v14 = vpop.f32.mrf.mxu0 }
 0x142   :  { %v121_v15 = vsel %vm120_vm2, %v64_v13, -inf }
 0x143   :  { %122 = vmax.xlane.f32.xlu1 %v121_v15  ;;  %v66_v16 = vpop.f32.mrf.mxu0  ;;  %v114_v17 = vpop.f32.mrf.mxu1 }
 0x144   :  { %v115_v18 = vadd.f32 %v114_v17, %v1289_v11 }
 0x145   :  { %v1085_v19 = vpop.f32.mrf.mxu0  ;;  %v1090_v20 = vpop.f32.mrf.mxu1 }
 0x146   :  { %v124_v21 = vsel %vm120_vm2, %v115_v18, -inf }
 0x147   :  { %125 = vmax.xlane.f32.xlu1 %v124_v21  ;;  %v117_v22 = vpop.f32.mrf.mxu1 }
 0x149   :  { %v1091_v23 = vpop.f32.mrf.mxu1 }
 0x158   :  { %305 = vrot.lane.b32.xlu1 %v1188_v10, %s1234_s16 }
 0x1cc   :  { %v123_v29 = vpop.xlane.xlu1 %122 }
 0x1cd   :  { %v127_v30 = vsub.f32 %v64_v13, %v123_v29 }
 0x1cf   :  { %v129_v31 = vmul.f32 1.442695, %v127_v30 }
 0x1d0   :  { %v126_v32 = vpop.xlane.xlu1 %125 }
 0x1d1   :  { %1199 = vpow2.f32 %v129_v31  ;;  %v128_v33 = vsub.f32 %v115_v18, %v126_v32 }
 0x1d3   :  { %v131_v34 = vmul.f32 1.442695, %v128_v33 }
 0x1d4   :  { %v306_v39 = vpop.permute.xlu1 %305 }
 0x1d5   :  { %1201 = vpow2.f32 %v131_v34  ;;  %v311_v41 = vsel %vm22_vm1, %v306_v39, 0 }
 0x1de   :  { %v1310_v36 = vpop.eup %1199 }
 0x1df   :  { %v139_v38 = vpack.c.bf16 %v1310_v36, %v1310_v36 }
 0x1e1   :  { %1095 = vmatmul.mubr.msk.bf16.vlgmr.msra.gmra.mxu0 %vm120_vm2, %v139_v38 }
 0x1e2   :  { %v1316_v40 = vpop.eup %1201  ;;  %1105 = vmatpush3.bf16.xpose.msra.mxu0 %v258_v37  ;;  %1106 = vmatprep.mubr.msk.bf16.mxu0 %vm1232_vm0, %v1231_v2 }
 0x1e3   :  { %v140_v42 = vpack.c.bf16 %v1316_v40, %v1316_v40  ;;  %1116 = vmatprep.subr.bf16.mxu0 %v1231_v2 }
 0x1e5   :  { %1101 = vmatmul.mubr.msk.bf16.vlgmr.msra.gmra.mxu1 %vm120_vm2, %v140_v42 }
 0x1e6   :  { %1111 = vmatpush3.bf16.xpose.msra.mxu1 %v311_v41  ;;  %1112 = vmatprep.mubr.msk.bf16.mxu1 %vm1232_vm0, %v1231_v2 }
 0x1e7   :  { %1122 = vmatprep.subr.bf16.mxu1 %v1231_v2 }
 0x1e9   :  { %1107 = vmatmul.mubr.msk.bf16.vlgmr.msra.gmra.mxu0 %vm22_vm1, %v251_v43 }
 0x1ea   :  { %1118 = vmatprep.mubr.msk.bf16.mxu0 %vm1232_vm0, %v1231_v2  ;;  %1117 = vmatpush3.bf16.msra.mxu0 %v382_v46 }
 0x1eb   :  { %1128 = vmatprep.subr.bf16.mxu0 %v1231_v2 }
 0x1ed   :  { %1113 = vmatmul.mubr.msk.bf16.vlgmr.msra.gmra.mxu1 %vm22_vm1, %v304_v44 }
 0x1ee   :  { %1124 = vmatprep.mubr.msk.bf16.mxu1 %vm1232_vm0, %v1231_v2 }
 0x2a1   :  { %v1336_v47 = vpop.f32.mrf.mxu0 }
 0x2a3   :  { %v1096_v48 = vpop.f32.mrf.mxu0 }
 0x2a5   :  { %v185_v49 = vpop.f32.mrf.mxu0  ;;  %v1338_v50 = vpop.f32.mrf.mxu1 }
 0x2a6   :  { %v1193_v49 = vld [vmem:[%s1498_s0 + $0xc] ss:$0 sps:$4 sm:$0xff]  }
 0x2a7   :  { %v1097_v51 = vpop.f32.mrf.mxu0  ;;  %v1102_v52 = vpop.f32.mrf.mxu1 }
 0x2a8   :  { %v1195_v51 = vld [vmem:[%s1498_s0] ss:$0 sps:$4 sm:$0xff]   ;;  %v1194_v52 = vld [vmem:[%s1498_s0 + $0x4] ss:$0 sps:$4 sm:$0xff]  }
 0x2a9   :  { %v231_v53 = vpop.f32.mrf.mxu1  ;;  %v294_v54 = vpop.f32.mrf.mxu0 }
 0x2aa   :  { %v295_v55 = vadd.f32 %v294_v54, %v1289_v11  ;;  %v1196_v53 = vld [vmem:[%s1498_s0 + $0x8] ss:$0 sps:$4 sm:$0xff]  }
 0x2ab   :  { %v1103_v56 = vpop.f32.mrf.mxu1  ;;  %v1108_v57 = vpop.f32.mrf.mxu0 }
 0x2ac   :  { %v353_v58 = vsel %vm120_vm2, %v295_v55, -inf }
 0x2ad   :  { %354 = vmax.xlane.f32.xlu0 %v353_v58  ;;  %v297_v59 = vpop.f32.mrf.mxu0  ;;  %v347_v60 = vpop.f32.mrf.mxu1 }
 0x2ae   :  { %v348_v61 = vadd.f32 %v347_v60, %v1289_v11 }
 0x2af   :  { %v1109_v62 = vpop.f32.mrf.mxu0  ;;  %v1114_v63 = vpop.f32.mrf.mxu1 }
 0x2b0   :  { %v356_v0 = vsel %vm120_vm2, %v348_v61, -inf }
 0x2b1   :  { %357 = vmax.xlane.f32.xlu1 %v356_v0  ;;  %v350_v1 = vpop.f32.mrf.mxu1 }
 0x2b3   :  { %v1115_v3 = vpop.f32.mrf.mxu1 }
 0x2c2   :  { %427 = vrot.lane.b32.xlu1 %v1190_v4, %s1235_s17 }
 0x2c3   :  { %505 = vrot.lane.b32.xlu0 %v1191_v5, %s1236_s3 }
 0x2c6   :  { %503 = vrot.lane.b32.xlu1 %v1191_v5, %s1237_s6 }
 0x2c7   :  { %558 = vrot.lane.b32.xlu0 %v1192_v6, %s1236_s3 }
 0x2cb   :  { %556 = vrot.lane.b32.xlu0 %v1192_v6, %s1237_s6 }
 0x336   :  { %v355_v7 = vpop.xlane.xlu0 %354 }
 0x337   :  { %v359_v8 = vsub.f32 %v295_v55, %v355_v7 }
 0x339   :  { %v361_v9 = vmul.f32 1.442695, %v359_v8 }
 0x33a   :  { %v358_v10 = vpop.xlane.xlu1 %357  ;;  %v506_v16 = vpop.permute.xlu0 %505 }
 0x33b   :  { %1203 = vpow2.f32 %v361_v9  ;;  %v360_v12 = vsub.f32 %v348_v61, %v358_v10  ;;  %v511_v18 = vsel %vm22_vm1, %v506_v16, 0 }
 0x33d   :  { %v363_v13 = vmul.f32 1.442695, %v360_v12 }
 0x33e   :  { %v428_v14 = vpop.permute.xlu1 %427  ;;  %v559_v20 = vpop.permute.xlu0 %558 }
 0x33f   :  { %1205 = vpow2.f32 %v363_v13  ;;  %v433_v15 = vsel %vm144_vm3, %v428_v14, 0  ;;  %v564_v22 = vsel %vm22_vm1, %v559_v20, 0 }
 0x340   :  { %1123 = vmatpush3.bf16.msra.mxu1 %v433_v15 }
 0x341   :  { %1134 = vmatprep.subr.bf16.mxu1 %v1231_v2 }
 0x342   :  { %v504_v24 = vpop.permute.xlu1 %503  ;;  %v557_v25 = vpop.permute.xlu0 %556 }
 0x348   :  { %v1360_v17 = vpop.eup %1203 }
 0x349   :  { %v371_v19 = vpack.c.bf16 %v1360_v17, %v1360_v17 }
 0x34b   :  { %1119 = vmatmul.mubr.msk.bf16.vlgmr.msra.gmra.mxu0 %vm120_vm2, %v371_v19 }
 0x34c   :  { %v1366_v21 = vpop.eup %1205  ;;  %1129 = vmatpush3.bf16.xpose.msra.mxu0 %v511_v18  ;;  %1130 = vmatprep.mubr.msk.bf16.mxu0 %vm1232_vm0, %v1231_v2 }
 0x34d   :  { %v372_v23 = vpack.c.bf16 %v1366_v21, %v1366_v21  ;;  %1140 = vmatprep.subr.bf16.mxu0 %v1231_v2 }
 0x34f   :  { %1125 = vmatmul.mubr.msk.bf16.vlgmr.msra.gmra.mxu1 %vm120_vm2, %v372_v23 }
 0x350   :  { %1135 = vmatpush3.bf16.xpose.msra.mxu1 %v564_v22  ;;  %1136 = vmatprep.mubr.msk.bf16.mxu1 %vm1232_vm0, %v1231_v2 }
 0x351   :  { %1146 = vmatprep.subr.bf16.mxu1 %v1231_v2 }
 0x353   :  { %1131 = vmatmul.mubr.msk.bf16.vlgmr.msra.gmra.mxu0 %vm22_vm1, %v504_v24 }
 0x354   :  { %1142 = vmatprep.mubr.msk.bf16.mxu0 %vm1232_vm0, %v1231_v2 }
 0x357   :  { %1137 = vmatmul.mubr.msk.bf16.vlgmr.msra.gmra.mxu1 %vm22_vm1, %v557_v25 }
 0x358   :  { %1148 = vmatprep.mubr.msk.bf16.mxu1 %vm1232_vm0, %v1231_v2 }
 0x40b   :  { %v1384_v26 = vpop.f32.mrf.mxu0 }
 0x40d   :  { %v1120_v27 = vpop.f32.mrf.mxu0 }
 0x40f   :  { %v421_v28 = vpop.f32.mrf.mxu0  ;;  %v1386_v29 = vpop.f32.mrf.mxu1 }
 0x411   :  { %v1121_v30 = vpop.f32.mrf.mxu0  ;;  %v1126_v31 = vpop.f32.mrf.mxu1 }
 0x413   :  { %v472_v32 = vpop.f32.mrf.mxu1  ;;  %v547_v33 = vpop.f32.mrf.mxu0 }
 0x414   :  { %v548_v34 = vadd.f32 %v547_v33, %v1289_v11 }
 0x415   :  { %v1127_v35 = vpop.f32.mrf.mxu1  ;;  %v1132_v37 = vpop.f32.mrf.mxu0 }
 0x416   :  { %v606_v38 = vsel %vm120_vm2, %v548_v34, -inf  ;;  %v1197_v35 = vld [vmem:[%s1498_s0 + $0xc] ss:$0 sps:$4 sm:$0xff]   ;;  %v1198_v37 = vld [vmem:[%s1498_s0 + $0x4] ss:$0 sps:$4 sm:$0xff]  }
 0x417   :  { %607 = vmax.xlane.f32.xlu1 %v606_v38  ;;  %v550_v39 = vpop.f32.mrf.mxu0  ;;  %v600_v41 = vpop.f32.mrf.mxu1 }
 0x418   :  { %v601_v42 = vadd.f32 %v600_v41, %v1289_v11  ;;  %v368_v39 = vsel %vm120_vm2, %v1366_v21, 0.0 }
 0x419   :  { %v1133_v43 = vpop.f32.mrf.mxu0  ;;  %v1138_v44 = vpop.f32.mrf.mxu1 }
 0x41a   :  { %v609_v45 = vsel %vm120_vm2, %v601_v42, -inf }
 0x41b   :  { %610 = vmax.xlane.f32.xlu0 %v609_v45  ;;  %v603_v46 = vpop.f32.mrf.mxu1 }
 0x41d   :  { %v1139_v48 = vpop.f32.mrf.mxu1 }
 0x428   :  { %680 = vrot.lane.b32.xlu1 %v1193_v49, %s1237_s6 }
 0x42c   :  { %758 = vrot.lane.b32.xlu1 %v1195_v51, %s1238_s11 }
 0x430   :  { %756 = vrot.lane.b32.xlu1 %v1195_v51, %s1239_s14 }
 0x431   :  { %629 = vrot.lane.b32.xlu0 %v1194_v52, %s1237_s6 }
 0x435   :  { %811 = vrot.lane.b32.xlu0 %v1196_v53, %s1238_s11 }
 0x439   :  { %809 = vrot.lane.b32.xlu0 %v1196_v53, %s1239_s14 }
 0x4a0   :  { %v608_v54 = vpop.xlane.xlu1 %607 }
 0x4a1   :  { %v612_v55 = vsub.f32 %v548_v34, %v608_v54 }
 0x4a3   :  { %v614_v56 = vmul.f32 1.442695, %v612_v55 }
 0x4a4   :  { %v611_v57 = vpop.xlane.xlu0 %610  ;;  %v681_v58 = vpop.permute.xlu1 %680 }
 0x4a5   :  { %1207 = vpow2.f32 %v614_v56  ;;  %v613_v59 = vsub.f32 %v601_v42, %v611_v57  ;;  %v686_v60 = vsel %vm144_vm3, %v681_v58, 0  ;;  %v133_v56 = vsel %vm120_vm2, %v1310_v36, 0.0 }
 0x4a6   :  { %1147 = vmatpush3.bf16.msra.mxu1 %v686_v60 }
 0x4a7   :  { %v616_v61 = vmul.f32 1.442695, %v613_v59  ;;  %1158 = vmatprep.subr.bf16.mxu1 %v1231_v2  ;;  %v136_v59 = vsel %vm120_vm2, %v1316_v40, 0.0 }
 0x4a8   :  { %v630_v62 = vpop.permute.xlu0 %629  ;;  %v759_v0 = vpop.permute.xlu1 %758 }
 0x4a9   :  { %1209 = vpow2.f32 %v616_v61  ;;  %v635_v63 = vsel %vm144_vm3, %v630_v62, 0  ;;  %v764_v3 = vsel %vm22_vm1, %v759_v0, 0 }
 0x4aa   :  { %1141 = vmatpush3.bf16.msra.mxu0 %v635_v63 }
 0x4ab   :  { %1152 = vmatprep.subr.bf16.mxu0 %v1231_v2 }
 0x4ac   :  { %v812_v5 = vpop.permute.xlu0 %811  ;;  %v757_v9 = vpop.permute.xlu1 %756 }
 0x4ad   :  { %v817_v7 = vsel %vm22_vm1, %v812_v5, 0 }
 0x4b0   :  { %v810_v10 = vpop.permute.xlu0 %809 }
 0x4b2   :  { %v1208_v1 = vpop.eup %1207 }
 0x4b3   :  { %v624_v4 = vpack.c.bf16 %v1208_v1, %v1208_v1  ;;  %v618_v41 = vsel %vm120_vm2, %v1208_v1, 0.0 }
 0x4b5   :  { %1143 = vmatmul.mubr.msk.bf16.vlgmr.msra.gmra.mxu0 %vm120_vm2, %v624_v4 }
 0x4b6   :  { %v1210_v6 = vpop.eup %1209  ;;  %1153 = vmatpush3.bf16.xpose.msra.mxu0 %v764_v3  ;;  %1154 = vmatprep.mubr.msk.bf16.mxu0 %vm1232_vm0, %v1231_v2 }
 0x4b7   :  { %v625_v8 = vpack.c.bf16 %v1210_v6, %v1210_v6  ;;  %1164 = vmatprep.subr.bf16.mxu0 %v1231_v2  ;;  %v621_v38 = vsel %vm120_vm2, %v1210_v6, 0.0 }
 0x4b9   :  { %1149 = vmatmul.mubr.msk.bf16.vlgmr.msra.gmra.mxu1 %vm120_vm2, %v625_v8 }
 0x4ba   :  { %1159 = vmatpush3.bf16.xpose.msra.mxu1 %v817_v7  ;;  %1160 = vmatprep.mubr.msk.bf16.mxu1 %vm1232_vm0, %v1231_v2 }
 0x4bb   :  { %1170 = vmatprep.subr.bf16.mxu1 %v1231_v2 }
 0x4bd   :  { %1155 = vmatmul.mubr.msk.bf16.vlgmr.msra.gmra.mxu0 %vm22_vm1, %v757_v9 }
 0x4be   :  { %1166 = vmatprep.mubr.msk.bf16.mxu0 %vm1232_vm0, %v1231_v2 }
 0x4c1   :  { %1161 = vmatmul.mubr.msk.bf16.vlgmr.msra.gmra.mxu1 %vm22_vm1, %v810_v10 }
 0x4c2   :  { %1172 = vmatprep.mubr.msk.bf16.mxu1 %vm1232_vm0, %v1231_v2 }
 0x575   :  { %v1430_v12 = vpop.f32.mrf.mxu0 }
 0x577   :  { %v1144_v13 = vpop.f32.mrf.mxu0 }
 0x579   :  { %v674_v14 = vpop.f32.mrf.mxu0  ;;  %v1432_v15 = vpop.f32.mrf.mxu1 }
 0x57b   :  { %v1145_v16 = vpop.f32.mrf.mxu0  ;;  %v1150_v18 = vpop.f32.mrf.mxu1 }
 0x57d   :  { %v725_v19 = vpop.f32.mrf.mxu1  ;;  %v800_v20 = vpop.f32.mrf.mxu0 }
 0x57e   :  { %v801_v22 = vadd.f32 %v800_v20, %v1289_v11 }
 0x57f   :  { %v1151_v23 = vpop.f32.mrf.mxu1  ;;  %v1156_v24 = vpop.f32.mrf.mxu0 }
 0x580   :  { %v859_v25 = vsel %vm120_vm2, %v801_v22, -inf }
 0x581   :  { %860 = vmax.xlane.f32.xlu1 %v859_v25  ;;  %v803_v27 = vpop.f32.mrf.mxu0  ;;  %v853_v28 = vpop.f32.mrf.mxu1 }
 0x582   :  { %v854_v2 = vadd.f32 %v853_v28, %v1289_v11  ;;  %v365_v11 = vsel %vm120_vm2, %v1360_v17, 0.0 }
 0x583   :  { %v1157_v30 = vpop.f32.mrf.mxu0  ;;  %v1162_v31 = vpop.f32.mrf.mxu1 }
 0x584   :  { %v862_v32 = vsel %vm120_vm2, %v854_v2, -inf }
 0x585   :  { %863 = vmax.xlane.f32.xlu0 %v862_v32  ;;  %v856_v33 = vpop.f32.mrf.mxu1 }
 0x587   :  { %v1163_v34 = vpop.f32.mrf.mxu1 }
 0x592   :  { %933 = vrot.lane.b32.xlu1 %v1197_v35, %s1239_s14 }
 0x59b   :  { %882 = vrot.lane.b32.xlu0 %v1198_v37, %s1239_s14 }
 0x5b6   :  { %366 = vadd.xlane.f32.xlu1 %v365_v11 }
 0x5ba   :  { %622 = vadd.xlane.f32.xlu1 %v621_v38  ;;  %369 = vadd.xlane.f32.xlu0 %v368_v39 }
 0x5be   :  { %619 = vadd.xlane.f32.xlu0 %v618_v41 }
 0x60a   :  { %v861_v42 = vpop.xlane.xlu1 %860 }
 0x60b   :  { %v865_v43 = vsub.f32 %v801_v22, %v861_v42 }
 0x60d   :  { %v867_v44 = vmul.f32 1.442695, %v865_v43 }
 0x60e   :  { %v864_v45 = vpop.xlane.xlu0 %863  ;;  %v934_v46 = vpop.permute.xlu1 %933 }
 0x60f   :  { %1211 = vpow2.f32 %v867_v44  ;;  %v866_v48 = vsub.f32 %v854_v2, %v864_v45  ;;  %v939_v17 = vsel %vm144_vm3, %v934_v46, 0 }
 0x610   :  { %1171 = vmatpush3.bf16.msra.mxu1 %v939_v17 }
 0x611   :  { %v869_v49 = vmul.f32 1.442695, %v866_v48 }
 0x612   :  { %v883_v51 = vpop.permute.xlu0 %882 }
 0x613   :  { %1213 = vpow2.f32 %v869_v49  ;;  %v888_v21 = vsel %vm144_vm3, %v883_v51, 0 }
 0x614   :  { %1165 = vmatpush3.bf16.msra.mxu0 %v888_v21 }
 0x61c   :  { %v1212_v52 = vpop.eup %1211 }
 0x61d   :  { %v871_v53 = vsel %vm120_vm2, %v1212_v52, 0.0  ;;  %v877_v54 = vpack.c.bf16 %v1212_v52, %v1212_v52 }
 0x61e   :  { %872 = vadd.xlane.f32.xlu0 %v871_v53 }
 0x61f   :  { %1167 = vmatmul.mubr.msk.bf16.vlgmr.msra.gmra.mxu0 %vm120_vm2, %v877_v54 }
 0x620   :  { %v1214_v55 = vpop.eup %1213 }
 0x621   :  { %v874_v57 = vsel %vm120_vm2, %v1214_v55, 0.0  ;;  %v878_v58 = vpack.c.bf16 %v1214_v55, %v1214_v55 }
 0x622   :  { %134 = vadd.xlane.f32.xlu0 %v133_v56  ;;  %875 = vadd.xlane.f32.xlu1 %v874_v57 }
 0x623   :  { %1173 = vmatmul.mubr.msk.bf16.vlgmr.msra.gmra.mxu1 %vm120_vm2, %v878_v58 }
 0x626   :  { %137 = vadd.xlane.f32.xlu1 %v136_v59 }
 0x63f   :  { %v367_v60 = vpop.xlane.xlu1 %366 }
 0x640   :  { %1215 = vrcp.f32 %v367_v60 }
 0x643   :  { %v623_v61 = vpop.xlane.xlu1 %622  ;;  %v370_v62 = vpop.xlane.xlu0 %369 }
 0x644   :  { %1217 = vrcp.f32 %v623_v61 }
 0x645   :  { %1219 = vrcp.f32 %v370_v62 }
 0x647   :  { %v620_v63 = vpop.xlane.xlu0 %619 }
 0x648   :  { %1221 = vrcp.f32 %v620_v63 }
 0x64d   :  { %v1216_v36 = vpop.eup %1215 }
 0x64e   :  { %v477_v0 = vmul.f32 %v1216_v36, %v1384_v26 }
 0x650   :  { %v1042_v1 = vpack.c.bf16 %v477_v0, %v477_v0 }
 0x651   :  { %v1218_v3 = vpop.eup %1217 }
 0x652   :  { %v1220_v4 = vpop.eup %1219  ;;  %487 = vrot.lane.b32.xlu0 %v1042_v1, %s1238_s11  ;;  %v731_v5 = vmul.f32 %v1218_v3, %v1432_v15 }
 0x653   :  { %v478_v40 = vmul.f32 %v1220_v4, %v1386_v29 }
 0x654   :  { %v1045_v6 = vpack.c.bf16 %v731_v5, %v731_v5 }
 0x655   :  { %v1222_v7 = vpop.eup %1221  ;;  %v1043_v8 = vpack.c.bf16 %v478_v40, %v478_v40 }
 0x656   :  { %742 = vrot.lane.b32.xlu0 %v1045_v6, %s1236_s3  ;;  %v730_v9 = vmul.f32 %v1222_v7, %v1430_v12 }
 0x657   :  { %489 = vrot.lane.b32.xlu1 %v1043_v8, %s1238_s11 }
 0x658   :  { %v1044_v10 = vpack.c.bf16 %v730_v9, %v730_v9 }
 0x65b   :  { %740 = vrot.lane.b32.xlu1 %v1044_v10, %s1236_s3 }
 0x6a7   :  { %v873_v26 = vpop.xlane.xlu0 %872 }
 0x6ab   :  { %v876_v13 = vpop.xlane.xlu1 %875  ;;  %v135_v14 = vpop.xlane.xlu0 %134 }
 0x6ac   :  { %1223 = vrcp.f32 %v135_v14 }
 0x6af   :  { %v138_v16 = vpop.xlane.xlu1 %137 }
 0x6b0   :  { %1225 = vrcp.f32 %v138_v16 }
 0x6b1   :  { %1227 = vrcp.f32 %v873_v26 }
 0x6b2   :  { %1229 = vrcp.f32 %v876_v13 }
 0x6b9   :  { %v1224_v15 = vpop.eup %1223 }
 0x6ba   :  { %v236_v29 = vmul.f32 %v1224_v15, %v1336_v47 }
 0x6bc   :  { %v238_v19 = vpack.c.bf16 %v236_v29, %v236_v29 }
 0x6bd   :  { %v1226_v18 = vpop.eup %1225 }
 0x6be   :  { %v237_v20 = vmul.f32 %v1226_v18, %v1338_v50  ;;  %241 = vst.msk [vmem:[%s1500_s2] sm:$0xf] %vm240_vm4, %v238_v19  ;;  %v1228_v24 = vpop.eup %1227 }
 0x6bf   :  { %v1230_v30 = vpop.eup %1229 }
 0x6c0   :  { %v239_v12 = vpack.c.bf16 %v237_v20, %v237_v20 }
 0x6c2   :  { %242 = vst.msk [vmem:[%s1500_s2 + $0x4] sm:$0xf] %vm240_vm4, %v239_v12 }
 0x6c4   :  { %v488_v22 = vpop.permute.xlu0 %487 }
 0x6c5   :  { %494 = vst.msk [vmem:[%s1500_s2] sm:$0xf] %vm493_vm5, %v488_v22 }
 0x6c8   :  { %v743_v47 = vpop.permute.xlu0 %742 }
 0x6c9   :  { %v490_v23 = vpop.permute.xlu1 %489 }
 0x6ca   :  { %495 = vst.msk [vmem:[%s1500_s2 + $0x4] sm:$0xf] %vm493_vm5, %v490_v23 }
 0x6cb   :  { %748 = vst.msk [vmem:[%s1500_s2 + $0x4] sm:$0xf] %vm746_vm6, %v743_v47 }
 0x6cd   :  { %v741_v50 = vpop.permute.xlu1 %740 }
 0x6ce   :  { %747 = vst.msk [vmem:[%s1500_s2] sm:$0xf] %vm746_vm6, %v741_v50 }
 0x6df   :  { %v924_v25 = vpop.f32.mrf.mxu0 }
 0x6e0   :  { %v983_v27 = vmul.f32 %v1228_v24, %v924_v25 }
 0x6e1   :  { %v1168_v28 = vpop.f32.mrf.mxu0 }
 0x6e2   :  { %v1046_v2 = vpack.c.bf16 %v983_v27, %v983_v27 }
 0x6e3   :  { %v927_v31 = vpop.f32.mrf.mxu0  ;;  %v975_v32 = vpop.f32.mrf.mxu1 }
 0x6e4   :  { %v984_v33 = vmul.f32 %v1230_v30, %v975_v32  ;;  %993 = vrot.lane.b32.xlu1 %v1046_v2, %s1234_s16 }
 0x6e5   :  { %v1169_v34 = vpop.f32.mrf.mxu0  ;;  %v1174_v35 = vpop.f32.mrf.mxu1 }
 0x6e6   :  { %v1047_v37 = vpack.c.bf16 %v984_v33, %v984_v33 }
 0x6e7   :  { %v978_v11 = vpop.f32.mrf.mxu1 }
 0x6e8   :  { %995 = vrot.lane.b32.xlu0 %v1047_v37, %s1234_s16 }
 0x6e9   :  { %v1175_v38 = vpop.f32.mrf.mxu1 }
 0x756   :  { %v994_v39 = vpop.permute.xlu1 %993 }
 0x757   :  { %1000 = vst.msk [vmem:[%s1500_s2] sm:$0xf] %vm999_vm7, %v994_v39 }
 0x75a   :  { %v996_v41 = vpop.permute.xlu0 %995 }
 0x75b   :  { %1001 = vst.msk [vmem:[%s1500_s2 + $0x4] sm:$0xf] %vm999_vm7, %v996_v41 }

// kernel: transformer_forward.14
= control target key start
LH: loop header
LB: loop body
LE: loop exit
PB: predicated region body
PF: predicated region fallthrough
CT: control target
= control target key end

     0   :  { %vm210_vm0 = vcmask 523264   ;;  %s371_s1 = inlined_call_operand.vmem [shape: bf16[256,64], index: 1, kind: input, shape index: {}]   ;;  %s372_s0 = inlined_call_operand.vmem [shape: bf16[16,256], index: 0, kind: input, shape index: {}]   ;;  %s373_s2 = inlined_call_operand.vmem [shape: f32[1,64], index: 2, kind: input, shape index: {}]   ;;  %s374_s3 = inlined_call_operand.vmem [shape: f32[16,64], index: 3, kind: input, shape index: {}]   ;;  %s375_s4 = inlined_call_operand.vmem [shape: f32[16,64], index: 4, kind: output, shape index: {}]  }
   0x1   :  { %v258_v0 = vld [vmem:[%s371_s1 + $0x78] sm:$0xff]   ;;  %v260_v2 = vld [vmem:[%s371_s1 + $0x70] sm:$0xff]   ;;  %v262_v4 = vld [vmem:[%s371_s1 + $0x68] sm:$0xff]  }
   0x2   :  { %v259_v1 = vld [vmem:[%s371_s1 + $0x38] sm:$0xff]   ;;  %236 = vmatprep.subr.bf16.mxu0 %v258_v0  ;;  %v261_v3 = vld [vmem:[%s371_s1 + $0x30] sm:$0xff]   ;;  %v263_v5 = vld [vmem:[%s371_s1 + $0x28] sm:$0xff]  }
   0x3   :  { %237 = vmatpush3.bf16.msra.mxu0 %v259_v1  ;;  %v264_v6 = vld [vmem:[%s371_s1 + $0x60] sm:$0xff]   ;;  %v266_v8 = vld [vmem:[%s371_s1 + $0x58] sm:$0xff]   ;;  %v268_v10 = vld [vmem:[%s371_s1 + $0x50] sm:$0xff]  }
   0x4   :  { %238 = vmatprep.subr.bf16.mxu0 %v260_v2  ;;  %v265_v7 = vld [vmem:[%s371_s1 + $0x20] sm:$0xff]   ;;  %v267_v9 = vld [vmem:[%s371_s1 + $0x18] sm:$0xff]   ;;  %v269_v12 = vld [vmem:[%s371_s1 + $0x10] sm:$0xff]  }
   0x5   :  { %v276_v11 = vld [vmem:[%s372_s0 + $0x4] ss:$8 sps:$4 sm:$0xff]   ;;  %v274_v17 = vld [vmem:[%s372_s0] ss:$8 sps:$4 sm:$0xff]  }
   0x6   :  { %197 = vmatprep.mubr.bf16.mxu0 %v276_v11  ;;  %v270_v13 = vld [vmem:[%s371_s1 + $0x48] sm:$0xff]   ;;  %v272_v15 = vld [vmem:[%s371_s1 + $0x40] sm:$0xff]  }
   0x7   :  { %239 = vmatpush3.bf16.msra.mxu0 %v261_v3  ;;  %v271_v14 = vld [vmem:[%s371_s1 + $0x8] sm:$0xff]   ;;  %v273_v16 = vld [vmem:[%s371_s1] sm:$0xff]  }
   0x8   :  { %240 = vmatprep.subr.bf16.mxu0 %v262_v4  ;;  %v217_v19 = vld [vmem:[%s373_s2] ss:$0 sm:$0xff]  ;;  %v207_v28 = vld [vmem:[%s374_s3 + $0x8] sm:$0xff] }
   0x9   :  { %v206_v22 = vld [vmem:[%s374_s3] sm:$0xff] }
   0xb   :  { %241 = vmatpush3.bf16.msra.mxu0 %v263_v5 }
   0xc   :  { %242 = vmatprep.subr.bf16.mxu0 %v264_v6 }
   0xf   :  { %243 = vmatpush3.bf16.msra.mxu0 %v265_v7 }
  0x10   :  { %244 = vmatprep.subr.bf16.mxu0 %v266_v8 }
  0x13   :  { %245 = vmatpush3.bf16.msra.mxu0 %v267_v9 }
  0x14   :  { %246 = vmatprep.subr.bf16.mxu0 %v268_v10 }
  0x17   :  { %247 = vmatpush3.bf16.msra.mxu0 %v269_v12 }
  0x18   :  { %248 = vmatprep.subr.bf16.mxu0 %v270_v13 }
  0x1b   :  { %249 = vmatpush3.bf16.msra.mxu0 %v271_v14 }
  0x1c   :  { %250 = vmatprep.subr.bf16.mxu0 %v272_v15 }
  0x1f   :  { %251 = vmatpush3.bf16.msra.mxu0 %v273_v16 }
  0x22   :  { %198 = vmatmul.mubr.bf16.vlgmr.msra.gmra.mxu0 %v274_v17 }
  0xe2   :  { %v252_v18 = vpop.f32.mrf.mxu0 }
  0xe4   :  { %v253_v20 = vpop.f32.mrf.mxu0 }
  0xe5   :  { %v254_v21 = vadd.f32 %v253_v20, %v252_v18 }
  0xe6   :  { %v255_v23 = vpop.f32.mrf.mxu0 }
  0xe7   :  { %v200_v24 = vadd.f32 %v254_v21, %v217_v19 }
  0xe8   :  { %v256_v25 = vpop.f32.mrf.mxu0 }
  0xe9   :  { %v208_v26 = vadd.f32 %v206_v22, %v200_v24  ;;  %v257_v27 = vadd.f32 %v256_v25, %v255_v23 }
  0xeb   :  { %211 = vst.msk [vmem:[%s375_s4] sm:$0xff] %vm210_vm0, %v208_v26  ;;  %v203_v29 = vadd.f32 %v257_v27, %v217_v19 }
  0xed   :  { %v209_v30 = vadd.f32 %v207_v28, %v203_v29 }
  0xef   :  { %212 = vst.msk [vmem:[%s375_s4 + $0x8] sm:$0xff] %vm210_vm0, %v209_v30 }

</bundles_post_ra>
